<compile_context>
chip_gen: v7x
topology: tpu7x:2x2x1
jax: 0.10.0
libtpu: 0.0.40
codegen_flags: <defaults>
</compile_context>

<pallas_src>
import functools

import numpy as np
import jax
import jax.numpy as jnp
from jax.experimental import pallas as pl
from jax.experimental.pallas import tpu as pltpu


# ----------------------------------------------------------------------------
# Dilate mask (host-side constant, identical to the torch meshgrid logic)
# ----------------------------------------------------------------------------
def build_dilate_mask(dilate_p: int) -> np.ndarray:
    i, j = np.meshgrid(np.arange(7), np.arange(7), indexing="ij")
    indexes = np.stack([i.flatten(), j.flatten()])                  # (2, 49)
    diff = np.abs(indexes.T[:, :, None] - indexes[None, :, :])      # (49, 2, 49)
    distances = diff.max(axis=1)                                    # Chebyshev  (49, 49)
    distances1 = diff.sum(axis=1)                                   # Manhattan  (49, 49)
    R = (distances == dilate_p) & (
        (distances1 == dilate_p) | (distances1 == 2 * dilate_p)
    )
    return R.astype(np.int32)                                       # (49, 49)


# ----------------------------------------------------------------------------
# Pallas kernel: one grid step per batch row (parallel -> both v7x TensorCores)
# ----------------------------------------------------------------------------
def _dilate_attn_kernel(x_ref, w_ref, mask_ref, bo_ref, out_ref, att_scratch,
                        *, h, d_k, d_out):
    bf16, f32 = jnp.bfloat16, jnp.float32
    hdk = h * d_k

    x_q = x_ref[0]                      # (nq, d_model+1) bf16 (ones column appended)
    x_k = x_ref[1]                      # (nk, d_model+1)
    x_v = x_ref[2]                      # (nk, d_model+1)
    w = w_ref[...]                      # (d_model+1, 2*h*d_k + h*d_out) bf16

    # Whole-head fused projections (biases folded in via the ones column;
    # 1/sqrt(d_k) folded into the Q slab; fc_o folded into the V slab per head).
    qproj = jnp.dot(x_q, w[:, :hdk], preferred_element_type=f32).astype(bf16)          # (nq, h*d_k)
    kproj = jnp.dot(x_k, w[:, hdk:2 * hdk], preferred_element_type=f32).astype(bf16)   # (nk, h*d_k)
    vproj = jnp.dot(x_v, w[:, 2 * hdk:], preferred_element_type=f32).astype(bf16)      # (nk, h*d_out)

    # Per-head q @ k^T, stacked on a leading head axis -> one batched softmax.
    for i in range(h):                   # h is small & static
        att_scratch[i] = jax.lax.dot_general(
            qproj[:, i * d_k:(i + 1) * d_k], kproj[:, i * d_k:(i + 1) * d_k],
            (((1,), (1,)), ((), ())), preferred_element_type=f32)        # (nq, nk)

    # Multiplicative dilate mask (matches torch: masked logits become 0, not -inf),
    # then one softmax over the last axis for all heads (f32, EUP approx reciprocal).
    att = att_scratch[...] * mask_ref[...]                               # (h, nq, nk)
    att = att - jnp.max(att, axis=-1, keepdims=True)
    p = jnp.exp(att)
    p = (p * pl.reciprocal(jnp.sum(p, axis=-1, keepdims=True), approx=True)).astype(bf16)

    # TODO(synk): nn.Dropout(0.1) is omitted (eval-mode identity).
    # Per-head P @ (V@Wo) accumulated into the final (nq, d_out) tile, single store.
    acc = bo_ref[...].astype(f32)                                        # (1, d_out) broadcasts
    for i in range(h):
        acc = acc + jnp.dot(p[i], vproj[:, i * d_out:(i + 1) * d_out],
                            preferred_element_type=f32)                 # (nq, d_out)
    out_ref[...] = acc.astype(out_ref.dtype)


# ----------------------------------------------------------------------------
# Wrapper: host-side weight folding / packing + pallas_call
# ----------------------------------------------------------------------------
def scaled_dot_product_dilate_attention(queries, keys, values, params, mask,
                                        *, h, d_k, d_v):
    b_s, nq, d_model = queries.shape
    nk = keys.shape[1]
    assert nq == nk == mask.shape[0] == mask.shape[1], "dilate mask fixes nq == nk"
    d_out = params["wo"].shape[1]
    scale = np.float32(1.0 / np.sqrt(d_k))
    dm1 = d_model + 1

    # ---- host-side prep (exact math; pure layout / folding transforms) ----
    # Q: fold 1/sqrt(d_k); bias becomes the extra (ones-column) weight row.
    wq_aug = jnp.concatenate([params["wq"] * scale, params["bq"] * scale], axis=0)  # (dm1, h*d_k)
    wk_aug = jnp.concatenate([params["wk"], params["bk"]], axis=0)                  # (dm1, h*d_k)
    # V: fold fc_o per head:  concat_h(p_h @ (x@Wv_h + bv_h)) @ Wo
    #                       = sum_h p_h @ (x @ (Wv_h@Wo_h) + bv_h@Wo_h)
    wo3 = params["wo"].reshape(h, d_v, d_out)
    wvo = jnp.einsum("dhv,hvo->dho",
                     params["wv"].reshape(d_model, h, d_v), wo3).reshape(d_model, h * d_out)
    bvo = jnp.einsum("ihv,hvo->iho",
                     params["bv"].reshape(1, h, d_v), wo3).reshape(1, h * d_out)
    wvo_aug = jnp.concatenate([wvo, bvo], axis=0)                                   # (dm1, h*d_out)
    # One packed weight slab, bf16 MXU operands.
    w_pack = jnp.concatenate([wq_aug, wk_aug, wvo_aug], axis=1).astype(jnp.bfloat16)  # (dm1, 2hdk+hdo)

    # Stack q/k/v (with the ones column) into one input array.
    ones = jnp.ones((b_s, nq, 1), queries.dtype)
    xqkv = jnp.stack([jnp.concatenate([queries, ones], axis=-1),
                      jnp.concatenate([keys,    ones], axis=-1),
                      jnp.concatenate([values,  ones], axis=-1)],
                     axis=1).astype(jnp.bfloat16)                                    # (b_s,3,nq,dm1)

    mask_f32 = mask.astype(jnp.float32)                                              # (nq, nk)
    bo = params["bo"].astype(jnp.float32)                                            # (1, d_out)

    kernel = functools.partial(_dilate_attn_kernel, h=h, d_k=d_k, d_out=d_out)

    grid_spec = pltpu.PrefetchScalarGridSpec(
        num_scalar_prefetch=0,
        grid=(b_s,),                                   # one step per batch row
        in_specs=[
            pl.BlockSpec((None, 3, nq, dm1), lambda b: (b, 0, 0, 0)),        # x q/k/v
            pl.BlockSpec((dm1, 2 * h * d_k + h * d_out), lambda b: (0, 0)),  # weights (resident)
            pl.BlockSpec((nq, nk), lambda b: (0, 0)),                        # dilate mask (resident)
            pl.BlockSpec((1, d_out), lambda b: (0, 0)),                      # output bias (resident)
        ],
        out_specs=pl.BlockSpec((None, nq, d_out), lambda b: (b, 0, 0)),
        scratch_shapes=[pltpu.VMEM((h, nq, nk), jnp.float32)],               # all-head logits
    )

    return pl.pallas_call(
        kernel,
        out_shape=jax.ShapeDtypeStruct((b_s, nq, d_out), jnp.float32),
        grid_spec=grid_spec,
        compiler_params=pltpu.CompilerParams(dimension_semantics=("parallel",)),
    )(xqkv, w_pack, mask_f32, bo)


# ----------------------------------------------------------------------------
# Deterministic parameter init (xavier-uniform weights, zero biases)
# ----------------------------------------------------------------------------
def init_params(key, d_model, d_k, d_v, h):
    def xavier(k, fan_in, fan_out):
        bound = np.sqrt(6.0 / (fan_in + fan_out))
        # stored already transposed: (in, out), so y = x @ W + b
        return jax.random.uniform(k, (fan_in, fan_out), jnp.float32, -bound, bound)

    k1, k2, k3, k4 = jax.random.split(key, 4)
    d_out = d_model // 8
    return {
        "wq": xavier(k1, d_model, h * d_k), "bq": jnp.zeros((1, h * d_k), jnp.float32),
        "wk": xavier(k2, d_model, h * d_k), "bk": jnp.zeros((1, h * d_k), jnp.float32),
        "wv": xavier(k3, d_model, h * d_v), "bv": jnp.zeros((1, h * d_v), jnp.float32),
        "wo": xavier(k4, h * d_v, d_out),   "bo": jnp.zeros((1, d_out), jnp.float32),
    }


# ----------------------------------------------------------------------------
# Plain-JAX reference (mirrors the PyTorch forward, eval-mode dropout)
# ----------------------------------------------------------------------------
def reference(queries, keys, values, params, mask, *, h, d_k, d_v):
    hp = jax.lax.Precision.HIGHEST
    b_s, nq, _ = queries.shape
    nk = keys.shape[1]
    q = (jnp.dot(queries, params["wq"], precision=hp) + params["bq"]).reshape(b_s, nq, h, d_k).transpose(0, 2, 1, 3)
    k = (jnp.dot(keys, params["wk"], precision=hp) + params["bk"]).reshape(b_s, nk, h, d_k).transpose(0, 2, 3, 1)
    v = (jnp.dot(values, params["wv"], precision=hp) + params["bv"]).reshape(b_s, nk, h, d_v).transpose(0, 2, 1, 3)
    att = jnp.matmul(q, k, precision=hp)
    att = att * mask.astype(jnp.float32)
    att = att / np.sqrt(d_k)
    att = jax.nn.softmax(att, axis=-1)
    out = jnp.matmul(att, v, precision=hp).transpose(0, 2, 1, 3).reshape(b_s, nq, h * d_v)
    return jnp.dot(out, params["wo"], precision=hp) + params["bo"]


if __name__ == "__main__":
    # Shapes fixed by the module: nq = nk = 49 (7x7 dilate grid).
    b_s, nq, nk = 2, 49, 49
    d_model, d_k, d_v, h = 32, 8, 8, 4
    dilate_p = 1

    key = jax.random.PRNGKey(0)
    kq, kk, kv, kp = jax.random.split(key, 4)
    queries = jax.random.normal(kq, (b_s, nq, d_model), jnp.float32)
    keys = jax.random.normal(kk, (b_s, nk, d_model), jnp.float32)
    values = jax.random.normal(kv, (b_s, nk, d_model), jnp.float32)

    params = init_params(kp, d_model, d_k, d_v, h)
    mask = jnp.asarray(build_dilate_mask(dilate_p))   # (49, 49) int32

    out = scaled_dot_product_dilate_attention(
        queries, keys, values, params, mask, h=h, d_k=d_k, d_v=d_v)
    out = jax.block_until_ready(out)

    ref = reference(queries, keys, values, params, mask, h=h, d_k=d_k, d_v=d_v)
    # Tolerance accounts for bf16 MXU operands (f32 accumulation) + approx reciprocal.
    np.testing.assert_allclose(np.asarray(out), np.asarray(ref), rtol=2e-2, atol=2e-2)

    print("KERNEL_OK")
</pallas_src>

<mosaic_0001>
module attributes {stable_mosaic.version = 11 : i64} {
  func.func @_dilate_attn_kernel(%arg0: i32, %arg1: memref<1x3x49x33xbf16, #tpu.memory_space<vmem>>, %arg2: memref<33x80xbf16, #tpu.memory_space<vmem>>, %arg3: memref<49x49xf32, #tpu.memory_space<vmem>>, %arg4: memref<1x4xf32, #tpu.memory_space<vmem>>, %arg5: memref<1x49x4xf32, #tpu.memory_space<vmem>>, %arg6: memref<4x49x49xf32, #tpu.memory_space<vmem>>) attributes {dimension_semantics = [#tpu.dimension_semantics<parallel>], iteration_bounds = array<i64: 2>, scalar_prefetch = 0 : i64, scratch_operands = 1 : i64, tpu.core_type = #tpu.core_type<tc>, window_params = [{transform_indices = @transform_0, window_bounds = array<i64: 1, 3, 49, 33>}, {pipeline_mode = #tpu.pipeline_mode<synchronous>, transform_indices = @transform_1, window_bounds = array<i64: 33, 80>}, {pipeline_mode = #tpu.pipeline_mode<synchronous>, transform_indices = @transform_2, window_bounds = array<i64: 49, 49>}, {pipeline_mode = #tpu.pipeline_mode<synchronous>, transform_indices = @transform_3, window_bounds = array<i64: 1, 4>}, {transform_indices = @transform_4, window_bounds = array<i64: 1, 49, 4>}]} {
    %c0 = arith.constant 0 : index
    %c0_0 = arith.constant 0 : index
    %c0_1 = arith.constant 0 : index
    %c0_2 = arith.constant 0 : index
    %0 = vector.load %arg1[%c0, %c0_0, %c0_1, %c0_2] : memref<1x3x49x33xbf16, #tpu.memory_space<vmem>>, vector<1x1x49x33xbf16>
    %1 = vector.shape_cast %0 : vector<1x1x49x33xbf16> to vector<49x33xbf16>
    %c0_3 = arith.constant 0 : index
    %c1 = arith.constant 1 : index
    %c0_4 = arith.constant 0 : index
    %c0_5 = arith.constant 0 : index
    %2 = vector.load %arg1[%c0_3, %c1, %c0_4, %c0_5] : memref<1x3x49x33xbf16, #tpu.memory_space<vmem>>, vector<1x1x49x33xbf16>
    %3 = vector.shape_cast %2 : vector<1x1x49x33xbf16> to vector<49x33xbf16>
    %c0_6 = arith.constant 0 : index
    %c2 = arith.constant 2 : index
    %c0_7 = arith.constant 0 : index
    %c0_8 = arith.constant 0 : index
    %4 = vector.load %arg1[%c0_6, %c2, %c0_7, %c0_8] : memref<1x3x49x33xbf16, #tpu.memory_space<vmem>>, vector<1x1x49x33xbf16>
    %5 = vector.shape_cast %4 : vector<1x1x49x33xbf16> to vector<49x33xbf16>
    %c0_9 = arith.constant 0 : index
    %c0_10 = arith.constant 0 : index
    %6 = vector.load %arg2[%c0_9, %c0_10] : memref<33x80xbf16, #tpu.memory_space<vmem>>, vector<33x80xbf16>
    %7 = vector.extract_strided_slice %6 {offsets = [0, 0], sizes = [33, 32], strides = [1, 1]} : vector<33x80xbf16> to vector<33x32xbf16>
    %cst = arith.constant dense<0.000000e+00> : vector<49x32xf32>
    %8 = tpu.matmul %1, %7, %cst {dimension_numbers = #tpu.dot_dimension_numbers<[1], [0], [0], [1], [0, 0, 1, 1], [], []>} : vector<49x33xbf16>, vector<33x32xbf16>, vector<49x32xf32> -> vector<49x32xf32>
    %9 = arith.truncf %8 : vector<49x32xf32> to vector<49x32xbf16>
    %10 = vector.extract_strided_slice %6 {offsets = [0, 32], sizes = [33, 32], strides = [1, 1]} : vector<33x80xbf16> to vector<33x32xbf16>
    %cst_11 = arith.constant dense<0.000000e+00> : vector<49x32xf32>
    %11 = tpu.matmul %3, %10, %cst_11 {dimension_numbers = #tpu.dot_dimension_numbers<[1], [0], [0], [1], [0, 0, 1, 1], [], []>} : vector<49x33xbf16>, vector<33x32xbf16>, vector<49x32xf32> -> vector<49x32xf32>
    %12 = arith.truncf %11 : vector<49x32xf32> to vector<49x32xbf16>
    %13 = vector.extract_strided_slice %6 {offsets = [0, 64], sizes = [33, 16], strides = [1, 1]} : vector<33x80xbf16> to vector<33x16xbf16>
    %cst_12 = arith.constant dense<0.000000e+00> : vector<49x16xf32>
    %14 = tpu.matmul %5, %13, %cst_12 {dimension_numbers = #tpu.dot_dimension_numbers<[1], [0], [0], [1], [0, 0, 1, 1], [], []>} : vector<49x33xbf16>, vector<33x16xbf16>, vector<49x16xf32> -> vector<49x16xf32>
    %15 = arith.truncf %14 : vector<49x16xf32> to vector<49x16xbf16>
    %16 = vector.extract_strided_slice %9 {offsets = [0, 0], sizes = [49, 8], strides = [1, 1]} : vector<49x32xbf16> to vector<49x8xbf16>
    %17 = vector.extract_strided_slice %12 {offsets = [0, 0], sizes = [49, 8], strides = [1, 1]} : vector<49x32xbf16> to vector<49x8xbf16>
    %cst_13 = arith.constant dense<0.000000e+00> : vector<49x49xf32>
    %18 = tpu.matmul %16, %17, %cst_13 {dimension_numbers = #tpu.dot_dimension_numbers<[1], [1], [0], [0], [0, 0, 1, 0], [], []>} : vector<49x8xbf16>, vector<49x8xbf16>, vector<49x49xf32> -> vector<49x49xf32>
    %c0_14 = arith.constant 0 : index
    %c0_15 = arith.constant 0 : index
    %c0_16 = arith.constant 0 : index
    %19 = vector.load %arg6[%c0_14, %c0_15, %c0_16] : memref<4x49x49xf32, #tpu.memory_space<vmem>>, vector<1x49x49xf32>
    %20 = vector.shape_cast %19 : vector<1x49x49xf32> to vector<49x49xf32>
    %21 = vector.shape_cast %18 : vector<49x49xf32> to vector<1x49x49xf32>
    tpu.vector_store %arg6[%c0_14, %c0_15, %c0_16], %21 {strides = array<i32>} : memref<4x49x49xf32, #tpu.memory_space<vmem>>, vector<1x49x49xf32>,
    %22 = vector.extract_strided_slice %9 {offsets = [0, 8], sizes = [49, 8], strides = [1, 1]} : vector<49x32xbf16> to vector<49x8xbf16>
    %23 = vector.extract_strided_slice %12 {offsets = [0, 8], sizes = [49, 8], strides = [1, 1]} : vector<49x32xbf16> to vector<49x8xbf16>
    %cst_17 = arith.constant dense<0.000000e+00> : vector<49x49xf32>
    %24 = tpu.matmul %22, %23, %cst_17 {dimension_numbers = #tpu.dot_dimension_numbers<[1], [1], [0], [0], [0, 0, 1, 0], [], []>} : vector<49x8xbf16>, vector<49x8xbf16>, vector<49x49xf32> -> vector<49x49xf32>
    %c1_18 = arith.constant 1 : index
    %c0_19 = arith.constant 0 : index
    %c0_20 = arith.constant 0 : index
    %25 = vector.load %arg6[%c1_18, %c0_19, %c0_20] : memref<4x49x49xf32, #tpu.memory_space<vmem>>, vector<1x49x49xf32>
    %26 = vector.shape_cast %25 : vector<1x49x49xf32> to vector<49x49xf32>
    %27 = vector.shape_cast %24 : vector<49x49xf32> to vector<1x49x49xf32>
    tpu.vector_store %arg6[%c1_18, %c0_19, %c0_20], %27 {strides = array<i32>} : memref<4x49x49xf32, #tpu.memory_space<vmem>>, vector<1x49x49xf32>,
    %28 = vector.extract_strided_slice %9 {offsets = [0, 16], sizes = [49, 8], strides = [1, 1]} : vector<49x32xbf16> to vector<49x8xbf16>
    %29 = vector.extract_strided_slice %12 {offsets = [0, 16], sizes = [49, 8], strides = [1, 1]} : vector<49x32xbf16> to vector<49x8xbf16>
    %cst_21 = arith.constant dense<0.000000e+00> : vector<49x49xf32>
    %30 = tpu.matmul %28, %29, %cst_21 {dimension_numbers = #tpu.dot_dimension_numbers<[1], [1], [0], [0], [0, 0, 1, 0], [], []>} : vector<49x8xbf16>, vector<49x8xbf16>, vector<49x49xf32> -> vector<49x49xf32>
    %c2_22 = arith.constant 2 : index
    %c0_23 = arith.constant 0 : index
    %c0_24 = arith.constant 0 : index
    %31 = vector.load %arg6[%c2_22, %c0_23, %c0_24] : memref<4x49x49xf32, #tpu.memory_space<vmem>>, vector<1x49x49xf32>
    %32 = vector.shape_cast %31 : vector<1x49x49xf32> to vector<49x49xf32>
    %33 = vector.shape_cast %30 : vector<49x49xf32> to vector<1x49x49xf32>
    tpu.vector_store %arg6[%c2_22, %c0_23, %c0_24], %33 {strides = array<i32>} : memref<4x49x49xf32, #tpu.memory_space<vmem>>, vector<1x49x49xf32>,
    %34 = vector.extract_strided_slice %9 {offsets = [0, 24], sizes = [49, 8], strides = [1, 1]} : vector<49x32xbf16> to vector<49x8xbf16>
    %35 = vector.extract_strided_slice %12 {offsets = [0, 24], sizes = [49, 8], strides = [1, 1]} : vector<49x32xbf16> to vector<49x8xbf16>
    %cst_25 = arith.constant dense<0.000000e+00> : vector<49x49xf32>
    %36 = tpu.matmul %34, %35, %cst_25 {dimension_numbers = #tpu.dot_dimension_numbers<[1], [1], [0], [0], [0, 0, 1, 0], [], []>} : vector<49x8xbf16>, vector<49x8xbf16>, vector<49x49xf32> -> vector<49x49xf32>
    %c3 = arith.constant 3 : index
    %c0_26 = arith.constant 0 : index
    %c0_27 = arith.constant 0 : index
    %37 = vector.load %arg6[%c3, %c0_26, %c0_27] : memref<4x49x49xf32, #tpu.memory_space<vmem>>, vector<1x49x49xf32>
    %38 = vector.shape_cast %37 : vector<1x49x49xf32> to vector<49x49xf32>
    %39 = vector.shape_cast %36 : vector<49x49xf32> to vector<1x49x49xf32>
    tpu.vector_store %arg6[%c3, %c0_26, %c0_27], %39 {strides = array<i32>} : memref<4x49x49xf32, #tpu.memory_space<vmem>>, vector<1x49x49xf32>,
    %c0_28 = arith.constant 0 : index
    %c0_29 = arith.constant 0 : index
    %c0_30 = arith.constant 0 : index
    %40 = vector.load %arg6[%c0_28, %c0_29, %c0_30] : memref<4x49x49xf32, #tpu.memory_space<vmem>>, vector<4x49x49xf32>
    %c0_31 = arith.constant 0 : index
    %c0_32 = arith.constant 0 : index
    %41 = vector.load %arg3[%c0_31, %c0_32] : memref<49x49xf32, #tpu.memory_space<vmem>>, vector<49x49xf32>
    %42 = vector.shape_cast %41 : vector<49x49xf32> to vector<1x49x49xf32>
    %43 = vector.broadcast %42 : vector<1x49x49xf32> to vector<4x49x49xf32>
    %44 = arith.mulf %40, %43 : vector<4x49x49xf32>
    %cst_33 = arith.constant dense<0xFF800000> : vector<4x49xf32>
    %45 = vector.multi_reduction <maximumf>, %44, %cst_33 [2] : vector<4x49x49xf32> to vector<4x49xf32>
    %46 = vector.shape_cast %45 : vector<4x49xf32> to vector<4x49x1xf32>
    %47 = vector.broadcast %46 : vector<4x49x1xf32> to vector<4x49x49xf32>
    %48 = arith.subf %44, %47 : vector<4x49x49xf32>
    %49 = math.exp %48 : vector<4x49x49xf32>
    %cst_34 = arith.constant dense<0.000000e+00> : vector<4x49xf32>
    %50 = vector.multi_reduction <add>, %49, %cst_34 [2] : vector<4x49x49xf32> to vector<4x49xf32>
    %51 = vector.shape_cast %50 : vector<4x49xf32> to vector<4x49x1xf32>
    %52 = tpu.reciprocal %51 {approx = true} : vector<4x49x1xf32> -> vector<4x49x1xf32>
    %53 = vector.broadcast %52 : vector<4x49x1xf32> to vector<4x49x49xf32>
    %54 = arith.mulf %49, %53 : vector<4x49x49xf32>
    %55 = arith.truncf %54 : vector<4x49x49xf32> to vector<4x49x49xbf16>
    %c0_35 = arith.constant 0 : index
    %c0_36 = arith.constant 0 : index
    %56 = vector.load %arg4[%c0_35, %c0_36] : memref<1x4xf32, #tpu.memory_space<vmem>>, vector<1x4xf32>
    %57 = vector.extract_strided_slice %55 {offsets = [0, 0, 0], sizes = [1, 49, 49], strides = [1, 1, 1]} : vector<4x49x49xbf16> to vector<1x49x49xbf16>
    %58 = vector.shape_cast %57 : vector<1x49x49xbf16> to vector<49x49xbf16>
    %59 = vector.extract_strided_slice %15 {offsets = [0, 0], sizes = [49, 4], strides = [1, 1]} : vector<49x16xbf16> to vector<49x4xbf16>
    %cst_37 = arith.constant dense<0.000000e+00> : vector<49x4xf32>
    %60 = tpu.matmul %58, %59, %cst_37 {dimension_numbers = #tpu.dot_dimension_numbers<[1], [0], [0], [1], [0, 0, 1, 1], [], []>} : vector<49x49xbf16>, vector<49x4xbf16>, vector<49x4xf32> -> vector<49x4xf32>
    %61 = vector.broadcast %56 : vector<1x4xf32> to vector<49x4xf32>
    %62 = arith.addf %61, %60 : vector<49x4xf32>
    %63 = vector.extract_strided_slice %55 {offsets = [1, 0, 0], sizes = [1, 49, 49], strides = [1, 1, 1]} : vector<4x49x49xbf16> to vector<1x49x49xbf16>
    %64 = vector.shape_cast %63 : vector<1x49x49xbf16> to vector<49x49xbf16>
    %65 = vector.extract_strided_slice %15 {offsets = [0, 4], sizes = [49, 4], strides = [1, 1]} : vector<49x16xbf16> to vector<49x4xbf16>
    %cst_38 = arith.constant dense<0.000000e+00> : vector<49x4xf32>
    %66 = tpu.matmul %64, %65, %cst_38 {dimension_numbers = #tpu.dot_dimension_numbers<[1], [0], [0], [1], [0, 0, 1, 1], [], []>} : vector<49x49xbf16>, vector<49x4xbf16>, vector<49x4xf32> -> vector<49x4xf32>
    %67 = arith.addf %62, %66 : vector<49x4xf32>
    %68 = vector.extract_strided_slice %55 {offsets = [2, 0, 0], sizes = [1, 49, 49], strides = [1, 1, 1]} : vector<4x49x49xbf16> to vector<1x49x49xbf16>
    %69 = vector.shape_cast %68 : vector<1x49x49xbf16> to vector<49x49xbf16>
    %70 = vector.extract_strided_slice %15 {offsets = [0, 8], sizes = [49, 4], strides = [1, 1]} : vector<49x16xbf16> to vector<49x4xbf16>
    %cst_39 = arith.constant dense<0.000000e+00> : vector<49x4xf32>
    %71 = tpu.matmul %69, %70, %cst_39 {dimension_numbers = #tpu.dot_dimension_numbers<[1], [0], [0], [1], [0, 0, 1, 1], [], []>} : vector<49x49xbf16>, vector<49x4xbf16>, vector<49x4xf32> -> vector<49x4xf32>
    %72 = arith.addf %67, %71 : vector<49x4xf32>
    %73 = vector.extract_strided_slice %55 {offsets = [3, 0, 0], sizes = [1, 49, 49], strides = [1, 1, 1]} : vector<4x49x49xbf16> to vector<1x49x49xbf16>
    %74 = vector.shape_cast %73 : vector<1x49x49xbf16> to vector<49x49xbf16>
    %75 = vector.extract_strided_slice %15 {offsets = [0, 12], sizes = [49, 4], strides = [1, 1]} : vector<49x16xbf16> to vector<49x4xbf16>
    %cst_40 = arith.constant dense<0.000000e+00> : vector<49x4xf32>
    %76 = tpu.matmul %74, %75, %cst_40 {dimension_numbers = #tpu.dot_dimension_numbers<[1], [0], [0], [1], [0, 0, 1, 1], [], []>} : vector<49x49xbf16>, vector<49x4xbf16>, vector<49x4xf32> -> vector<49x4xf32>
    %77 = arith.addf %72, %76 : vector<49x4xf32>
    %c0_41 = arith.constant 0 : index
    %c0_42 = arith.constant 0 : index
    %c0_43 = arith.constant 0 : index
    %78 = vector.load %arg5[%c0_41, %c0_42, %c0_43] : memref<1x49x4xf32, #tpu.memory_space<vmem>>, vector<1x49x4xf32>
    %79 = vector.shape_cast %78 : vector<1x49x4xf32> to vector<49x4xf32>
    %80 = vector.shape_cast %77 : vector<49x4xf32> to vector<1x49x4xf32>
    tpu.vector_store %arg5[%c0_41, %c0_42, %c0_43], %80 {strides = array<i32>} : memref<1x49x4xf32, #tpu.memory_space<vmem>>, vector<1x49x4xf32>,
    return
  }
  func.func @transform_0(%arg0: i32) -> (i32, i32, i32, i32) {
    %c0_i32 = arith.constant 0 : i32
    %c0_i32_0 = arith.constant 0 : i32
    %c0_i32_1 = arith.constant 0 : i32
    %c0_i32_2 = arith.constant 0 : i32
    return %arg0, %c0_i32, %c0_i32_0, %c0_i32_1 : i32, i32, i32, i32
  }
  func.func @transform_1(%arg0: i32) -> (i32, i32) {
    %c0_i32 = arith.constant 0 : i32
    %c0_i32_0 = arith.constant 0 : i32
    %c0_i32_1 = arith.constant 0 : i32
    return %c0_i32, %c0_i32_0 : i32, i32
  }
  func.func @transform_2(%arg0: i32) -> (i32, i32) {
    %c0_i32 = arith.constant 0 : i32
    %c0_i32_0 = arith.constant 0 : i32
    %c0_i32_1 = arith.constant 0 : i32
    return %c0_i32, %c0_i32_0 : i32, i32
  }
  func.func @transform_3(%arg0: i32) -> (i32, i32) {
    %c0_i32 = arith.constant 0 : i32
    %c0_i32_0 = arith.constant 0 : i32
    %c0_i32_1 = arith.constant 0 : i32
    return %c0_i32, %c0_i32_0 : i32, i32
  }
  func.func @transform_4(%arg0: i32) -> (i32, i32, i32) {
    %c0_i32 = arith.constant 0 : i32
    %c0_i32_0 = arith.constant 0 : i32
    %c0_i32_1 = arith.constant 0 : i32
    return %arg0, %c0_i32, %c0_i32_0 : i32, i32, i32
  }
}

</mosaic_0001>

<bundles_post_ra>
// kernel: tpu_custom_call.1
= control target key start
LH: loop header
LB: loop body
LE: loop exit
PB: predicated region body
PF: predicated region fallthrough
CT: control target
= control target key end

     0   :  { %s2417_s15 = smov 0   ;;  %s3015_s0 = inlined_call_operand.vmem [shape: bf16[2,3,49,33], index: 0, kind: input, shape index: {}]   ;;  %s3016_s1 = inlined_call_operand.vmem [shape: bf16[33,80], index: 1, kind: input, shape index: {}]   ;;  %s3017_s2 = inlined_call_operand.vmem [shape: f32[49,49], index: 2, kind: input, shape index: {}]   ;;  %s3018_s3 = inlined_call_operand.vmem [shape: f32[1,4], index: 3, kind: input, shape index: {}]   ;;  %s3019_s4 = inlined_call_operand.vmem [shape: f32[2,49,4], index: 4, kind: output, shape index: {}]  }
   0x1 LB: > { %s1846_s16 = sadd.s32 4294967295, %s2382_s15   ;;  %p1850_p0 = scmp.ge.s32.totalorder %s2382_s15, 1  ;;  %s2382_s15 = sphi %s2417_s15, %s14_s15  }
   0x2   : > { %p162_p1 = scmp.lt.s32.totalorder %s2382_s15, 3 }
   0x4   : > { %p163_p2 = pnand %p1850_p0, %p162_p1 }
   0x5   : > { %v2249_v0 = vld [vmem:[%s3016_s1] sm:$0xff] (!%p163_p2)   ;;  %v2250_v1 = vld [vmem:[%s3016_s1 + $0x8] sm:$0xff] (!%p163_p2)   ;;  %vm273_vm0 = vcmask (!%p163_p2), 1040384   ;;  %s2384_s21 = smov (!%p163_p2), 96   ;;  %v2385_v3 = vmov (!%p163_p2), 0   ;;  %p188_p3 = scmp.lt.s32.totalorder (!%p163_p2), %s1846_s16, 1 }
   0x6   : > { %166 = sbr.rel (%p163_p2) target bundleno = 1318 (0x526), region = 36  ;;  %365 = vrot.lane.b32.xlu0 (!%p163_p2), %v2249_v0, %s2384_s21  ;;  %v2251_v2 = vld [vmem:[%s3016_s1 + $0x10] ss:$0 sps:$4 sm:$0x11] (!%p163_p2)   ;;  %2014 = vmatprep.subr.bf16.mxu0 (!%p163_p2), %v2249_v0  ;;  %v2434_v4 = vsel (!%p163_p2), %vm273_vm0, 65535, %v2385_v3  ;;  %vm260_vm1 = vcmask (!%p163_p2), 269312  }
   0x7   : > { %2015 = vmatpush3.bf16.msra.mxu0 (!%p163_p2), %v2249_v0  ;;  %369 = vrot.lane.b32.xlu1 (!%p163_p2), %v2251_v2, %s2384_s21  ;;  %v277_v5 = vand.u32 (!%p163_p2), %v2251_v2, %v2434_v4  ;;  %s2386_s28 = smov (!%p163_p2), 64   ;;  %vm565_vm2 = vcmask (!%p163_p2), 64512   ;;  %s2387_s29 = smov (!%p163_p2), 120   ;;  %vm654_vm3 = vcmask (!%p163_p2), 400384   ;;  %vm661_vm4 = vcmask (!%p163_p2), 393216  }
   0x8   : > { %2016 = vmatprep.subr.bf16.mxu0 (!%p163_p2), %v2250_v1  ;;  %s2388_s30 = smov (!%p163_p2), 112   ;;  %s2389_s5 = smov (!%p163_p2), 104   ;;  %vm1782_vm5 = vcmask (!%p163_p2), 31744   ;;  %vm1789_vm6 = vcmask (!%p163_p2), 24576  }
   0x9   : > { %s2390_s6 = smov (!%p163_p2), 124   ;;  %s2391_s23 = smov (!%p163_p2), 116  }
   0xa   : > { %367 = vrot.lane.b32.xlu0 (!%p163_p2), %v2250_v1, %s2384_s21 }
   0xb   : > { %2017 = vmatpush3.bf16.msra.mxu0 (!%p163_p2), %v2250_v1  ;;  %474 = vrot.lane.b32.xlu1 (!%p163_p2), %v2249_v0, %s2386_s28 }
   0xc   : > { %2018 = vmatprep.subr.bf16.mxu0 (!%p163_p2), %v277_v5 }
   0xd   : > { %s3021_s16 = smov (!%p188_p3, %s1846_s16), 1 }
   0xe   : > { %s2231_s24 = smul.u32 84, %s3021_s16  ;;  %476 = vrot.lane.b32.xlu0 %v2250_v1, %s2386_s28 }
   0xf   : > { %2019 = vmatpush3.bf16.msra.mxu0 %v277_v5  ;;  %478 = vrot.lane.b32.xlu1 %v2251_v2, %s2386_s28 }
  0x10   : > { %s2443_s27 = scalar_lea.vmem %s3015_s0, %s2231_s24  ;;  %s2232_s24 = smul.u32 56, %s3021_s16 }
  0x11   : > { %v2252_v6 = vld [vmem:[%s2443_s27 + $0x1c] sm:$0xff]   ;;  %v2257_v8 = vld [vmem:[%s2443_s27 + $0x8] sm:$0xff]   ;;  %v2258_v9 = vld [vmem:[%s2443_s27 + $0x10] sm:$0xff]  }
  0x12   : > { %2034 = vmatprep.mubr.msk.bf16.mxu1 %vm260_vm1, %v2252_v6  ;;  %v2256_v7 = vld [vmem:[%s2443_s27] sm:$0xff]   ;;  %v2259_v10 = vld [vmem:[%s2443_s27 + $0x18] ss:$0 sps:$4 sm:$0x11]   ;;  %v2254_v19 = vld [vmem:[%s2443_s27 + $0x2c] sm:$0xff]  }
  0x13   : > { %2020 = vmatprep.mubr.msk.bf16.mxu0 %vm260_vm1, %v2256_v7  ;;  %v2260_v11 = vld [vmem:[%s2443_s27 + $0x38] sm:$0xff]   ;;  %v2253_v17 = vld [vmem:[%s2443_s27 + $0x24] sm:$0xff]   ;;  %v2255_v22 = vld [vmem:[%s2443_s27 + $0x34] ss:$0 sps:$4 sm:$0x11]  }
  0x14   : > { %2021 = vmatmul.mubr.msk.bf16.vlgmr.msra.gmra.mrb[0].mxu0 %vm260_vm1, %v2257_v8  ;;  %v2261_v23 = vld [vmem:[%s2443_s27 + $0x40] sm:$0xff]   ;;  %v2262_v24 = vld [vmem:[%s2443_s27 + $0x48] sm:$0xff]   ;;  %v2263_v25 = vld [vmem:[%s2443_s27 + $0x50] ss:$0 sps:$4 sm:$0x11]  }
  0x15   : > { %2024 = vmatprep.mubr.msk.bf16.mxu0 %vm260_vm1, %v2258_v9 }
  0x1c   : > { %2025 = vmatmul.mubr.msk.bf16.gmra.mrb[4].mxu0 %vm260_vm1, %v2259_v10 }
  0x1d   : > { %2048 = vmatprep.mubr.msk.bf16.mxu0 %vm260_vm1, %v2260_v11 }
  0x78   : > { %v366_v12 = vpop.permute.xlu0 %365 }
  0x79   : > { %2028 = vmatprep.subr.bf16.mxu1 %v366_v12  ;;  %v370_v13 = vpop.permute.xlu1 %369 }
  0x7a   : > { %2029 = vmatpush3.bf16.msra.mxu1 %v366_v12  ;;  %v386_v14 = vand.u32 %v370_v13, %v2434_v4 }
  0x7c   : > { %v368_v15 = vpop.permute.xlu0 %367 }
  0x7d   : > { %2030 = vmatprep.subr.bf16.mxu1 %v368_v15  ;;  %v475_v16 = vpop.permute.xlu1 %474 }
  0x7e   : > { %2031 = vmatpush3.bf16.msra.mxu1 %v368_v15  ;;  %2042 = vmatprep.subr.bf16.mxu0 %v475_v16 }
  0x7f   : > { %2032 = vmatprep.subr.bf16.mxu1 %v386_v14  ;;  %2043 = vmatpush3.bf16.msra.mxu0 %v475_v16 }
  0x80   : > { %v477_v18 = vpop.permute.xlu0 %476 }
  0x81   : > { %2044 = vmatprep.subr.bf16.mxu0 %v477_v18  ;;  %v479_v20 = vpop.permute.xlu1 %478 }
  0x82   : > { %2033 = vmatpush3.bf16.msra.mxu1 %v386_v14  ;;  %v495_v21 = vand.u32 %v479_v20, %v2434_v4 }
  0x83   : > { %2045 = vmatpush3.bf16.msra.mxu0 %v477_v18 }
  0x84   : > { %2046 = vmatprep.subr.bf16.mxu0 %v495_v21 }
  0x85   : > { %2035 = vmatmul.mubr.msk.bf16.vlgmr.msra.gmra.mrb[0].mxu1 %vm260_vm1, %v2253_v17 }
  0x86   : > { %2038 = vmatprep.mubr.msk.bf16.mxu1 %vm260_vm1, %v2254_v19 }
  0x87   : > { %2047 = vmatpush3.bf16.msra.mxu0 %v495_v21 }
  0x8a   : > { %2049 = vmatmul.mubr.msk.bf16.vlgmr.msra.gmra.mrb[8].mxu0 %vm260_vm1, %v2261_v23 }
  0x8b   : > { %2052 = vmatprep.mubr.msk.bf16.mxu0 %vm260_vm1, %v2262_v24 }
  0x8d   : > { %2039 = vmatmul.mubr.msk.bf16.gmra.mrb[4].mxu1 %vm260_vm1, %v2255_v22 }
  0x92   : > { %2053 = vmatmul.mubr.msk.bf16.gmra.mrb[12].mxu0 %vm260_vm1, %v2263_v25 }
  0xe7   : > { %v2022_v26 = vpop.f32.mrb[0].mxu0 }
  0xe8   : > { %v313_v27 = vpop.f32.mrb[1].mxu0 }
  0xe9   : > { %v2023_v28 = vpop.f32.mrb[2].mxu0 }
  0xea   : > { %v344_v29 = vpack.c.bf16 %v2023_v28, %v2022_v26  ;;  %v316_v30 = vpop.f32.mrb[3].mxu0 }
  0xeb   : > { %v343_v31 = vpack.c.bf16 %v316_v30, %v313_v27 }
  0xed   : > { %2064 = vmatprep.mubr.msk.bf16.mxu0 %vm565_vm2, %v343_v31 }
  0xef   : > { %v2026_v32 = vpop.f32.mrb[4].mxu0 }
  0xf0   : > { %v329_v33 = vpop.f32.mrb[5].mxu0  ;;  %v346_v51 = vpack.c.bf16 %v2026_v32, %v2026_v32 }
  0xf1   : > { %v2027_v34 = vpop.f32.mrb[6].mxu0 }
  0xf2   : > { %v332_v35 = vpop.f32.mrb[7].mxu0 }
  0xf3   : > { %v345_v36 = vpack.c.bf16 %v332_v35, %v329_v33 }
 0x158   : > { %v2036_v37 = vpop.f32.mrb[0].mxu1 }
 0x159   : > { %v422_v38 = vpop.f32.mrb[1].mxu1 }
 0x15a   : > { %v2037_v39 = vpop.f32.mrb[2].mxu1 }
 0x15b   : > { %v453_v40 = vpack.c.bf16 %v2037_v39, %v2036_v37  ;;  %v425_v41 = vpop.f32.mrb[3].mxu1 }
 0x15c   : > { %v452_v42 = vpack.c.bf16 %v425_v41, %v422_v38 }
 0x15d   : > { %681 = vrot.lane.b32.xlu1 %v453_v40, %s2387_s29  ;;  %v582_v49 = vsel %vm565_vm2, %v453_v40, 0  ;;  %v2050_v54 = vpop.f32.mrb[8].mxu0 }
 0x15e   : > { %679 = vrot.lane.b32.xlu0 %v452_v42, %s2387_s29  ;;  %2215 = vmatprep.subr.msk.bf16.mxu0 %vm565_vm2, %v452_v42  ;;  %v579_v43 = vsel %vm565_vm2, %v452_v42, 0  ;;  %v531_v55 = vpop.f32.mrb[9].mxu0 }
 0x15f   : > { %2057 = vmatpush3.bf16.xpose.msra.mxu0 %v579_v43  ;;  %v2051_v56 = vpop.f32.mrb[10].mxu0 }
 0x160   : > { %v2040_v44 = vpop.f32.mrb[4].mxu1  ;;  %2216 = vmatprep.subr.msk.bf16.mxu0 %vm565_vm2, %v453_v40  ;;  %v2499_v57 = vpack.c.bf16 %v2051_v56, %v2050_v54  ;;  %v534_v58 = vpop.f32.mrb[11].mxu0 }
 0x161   : > { %791 = vrot.lane.b32.xlu1 %v452_v42, %s2388_s30  ;;  %v438_v45 = vpop.f32.mrb[5].mxu1  ;;  %v455_v50 = vpack.c.bf16 %v2040_v44, %v2040_v44  ;;  %v2501_v59 = vpack.c.bf16 %v534_v58, %v531_v55  ;;  %v2568_v44 = vld [vmem:[%s3017_s2 + $0x10] sm:$0xff] }
 0x162   : > { %v2041_v46 = vpop.f32.mrb[6].mxu1 }
 0x163   : > { %v441_v47 = vpop.f32.mrb[7].mxu1  ;;  %v588_v53 = vsel %vm565_vm2, %v455_v50, 0 }
 0x164   : > { %v454_v48 = vpack.c.bf16 %v441_v47, %v438_v45  ;;  %v2573_v47 = vld [vmem:[%s3017_s2] sm:$0xff] }
 0x165   : > { %793 = vrot.lane.b32.xlu1 %v453_v40, %s2388_s30  ;;  %v2054_v60 = vpop.f32.mrb[12].mxu0 }
 0x166   : > { %683 = vrot.lane.b32.xlu0 %v454_v48, %s2387_s29  ;;  %v585_v52 = vsel %vm565_vm2, %v454_v48, 0  ;;  %v2507_v61 = vpack.c.bf16 %v2054_v60, %v2054_v60  ;;  %v547_v62 = vpop.f32.mrb[13].mxu0 }
 0x167   : > { %2059 = vmatpush3.bf16.xpose.msra.mxu0 %v582_v49  ;;  %v2055_v63 = vpop.f32.mrb[14].mxu0 }
 0x168   : > { %2217 = vmatprep.subr.msk.bf16.mxu0 %vm565_vm2, %v454_v48  ;;  %v550_v0 = vpop.f32.mrb[15].mxu0  ;;  %v1408_v32 = vand.u32 %v2507_v61, %v2434_v4  ;;  %v2599_v63 = vld [vmem:[%s3017_s2 + $0x18] sm:$0xff] }
 0x169   : > { %669 = vrot.lane.b32.xlu1 %v344_v29, %s2387_s29  ;;  %v2510_v1 = vpack.c.bf16 %v550_v0, %v547_v62 }
 0x16a   : > { %685 = vrot.lane.b32.xlu0 %v455_v50, %s2387_s29 }
 0x16d   : > { %903 = vrot.lane.b32.xlu1 %v452_v42, %s2389_s5 }
 0x16e   : > { %667 = vrot.lane.b32.xlu0 %v343_v31, %s2387_s29 }
 0x16f   : > { %2061 = vmatpush3.bf16.xpose.msra.mxu0 %v585_v52 }
 0x170   : > { %2218 = vmatprep.subr.msk.bf16.mxu0 %vm565_vm2, %v455_v50 }
 0x171   : > { %673 = vrot.lane.b32.xlu1 %v346_v51, %s2387_s29 }
 0x172   : > { %795 = vrot.lane.b32.xlu0 %v454_v48, %s2388_s30 }
 0x175   : > { %905 = vrot.lane.b32.xlu1 %v453_v40, %s2389_s5 }
 0x176   : > { %671 = vrot.lane.b32.xlu0 %v345_v36, %s2387_s29 }
 0x177   : > { %2063 = vmatpush3.bf16.xpose.msra.mxu0 %v588_v53 }
 0x179   : > { %785 = vrot.lane.b32.xlu1 %v344_v29, %s2388_s30 }
 0x17a   : > { %797 = vrot.lane.b32.xlu0 %v455_v50, %s2388_s30 }
 0x17d   : > { %787 = vrot.lane.b32.xlu1 %v345_v36, %s2388_s30 }
 0x17e   : > { %2065 = vmatmul.mubr.msk.bf16.vlgmr.msra.gmra.mrb[16].mxu0 %vm565_vm2, %v344_v29  ;;  %783 = vrot.lane.b32.xlu0 %v343_v31, %s2388_s30 }
 0x17f   : > { %2068 = vmatprep.mubr.msk.bf16.mxu0 %vm565_vm2, %v345_v36 }
 0x181   : > { %909 = vrot.lane.b32.xlu1 %v455_v50, %s2389_s5  ;;  %v2582_v50 = vld [vmem:[%s3017_s2 + $0x8] sm:$0xff] }
 0x182   : > { %907 = vrot.lane.b32.xlu0 %v454_v48, %s2389_s5 }
 0x185   : > { %897 = vrot.lane.b32.xlu1 %v344_v29, %s2389_s5 }
 0x186   : > { %789 = vrot.lane.b32.xlu0 %v346_v51, %s2388_s30  ;;  %2069 = vmatmul.mubr.msk.bf16.gmra.mrb[20].mxu0 %vm565_vm2, %v346_v51 }
 0x189   : > { %901 = vrot.lane.b32.xlu1 %v346_v51, %s2389_s5 }
 0x18a   : > { %895 = vrot.lane.b32.xlu0 %v343_v31, %s2389_s5 }
 0x18d   : > { %1491 = vrot.lane.b32.xlu1 %v2501_v59, %s2390_s6 }
 0x18e   : > { %899 = vrot.lane.b32.xlu0 %v345_v36, %s2389_s5 }
 0x191   : > { %1493 = vrot.lane.b32.xlu1 %v2499_v57, %s2390_s6 }
 0x192   : > { %1590 = vrot.lane.b32.xlu0 %v2499_v57, %s2387_s29 }
 0x195   : > { %1497 = vrot.lane.b32.xlu1 %v2507_v61, %s2390_s6 }
 0x196   : > { %1495 = vrot.lane.b32.xlu0 %v2510_v1, %s2390_s6 }
 0x199   : > { %1588 = vrot.lane.b32.xlu1 %v2501_v59, %s2387_s29 }
 0x19a   : > { %1592 = vrot.lane.b32.xlu0 %v2510_v1, %s2387_s29 }
 0x1cf   : > { %v682_v2 = vpop.permute.xlu1 %681 }
 0x1d0   : > { %v680_v3 = vpop.permute.xlu0 %679  ;;  %v703_v10 = vsel %vm565_vm2, %v682_v2, 0 }
 0x1d1   : > { %2219 = vmatprep.subr.msk.bf16.mxu0 %vm565_vm2, %v680_v3  ;;  %v700_v5 = vsel %vm565_vm2, %v680_v3, 0 }
 0x1d2   : > { %2073 = vmatpush3.bf16.xpose.msra.mxu0 %v700_v5 }
 0x1d3   : > { %v792_v6 = vpop.permute.xlu1 %791  ;;  %2220 = vmatprep.subr.msk.bf16.mxu0 %vm565_vm2, %v682_v2  ;;  %v2607_v2 = vld [vmem:[%s3017_s2 + $0x30] sm:$0x1] }
 0x1d4   : > { %v812_v7 = vsel %vm565_vm2, %v792_v6, 0  ;;  %2223 = vmatprep.subr.msk.bf16.mxu1 %vm565_vm2, %v792_v6 }
 0x1d5   : > { %2089 = vmatpush3.bf16.xpose.msra.mxu1 %v812_v7  ;;  %v2617_v7 = vld [vmem:[%s3017_s2 + $0x20] sm:$0xff] }
 0x1d7   : > { %v794_v8 = vpop.permute.xlu1 %793 }
 0x1d8   : > { %2224 = vmatprep.subr.msk.bf16.mxu1 %vm565_vm2, %v794_v8  ;;  %v684_v9 = vpop.permute.xlu0 %683  ;;  %v815_v12 = vsel %vm565_vm2, %v794_v8, 0 }
 0x1d9   : > { %v706_v16 = vsel %vm565_vm2, %v684_v9, 0 }
 0x1da   : > { %2075 = vmatpush3.bf16.xpose.msra.mxu0 %v703_v10  ;;  %v2625_v10 = vld [vmem:[%s3017_s2 + $0x28] sm:$0xff] }
 0x1db   : > { %v670_v11 = vpop.permute.xlu1 %669  ;;  %2221 = vmatprep.subr.msk.bf16.mxu0 %vm565_vm2, %v684_v9 }
 0x1dc   : > { %v686_v13 = vpop.permute.xlu0 %685 }
 0x1dd   : > { %2091 = vmatpush3.bf16.xpose.msra.mxu1 %v815_v12  ;;  %v709_v21 = vsel %vm565_vm2, %v686_v13, 0 }
 0x1df   : > { %v904_v14 = vpop.permute.xlu1 %903 }
 0x1e0   : > { %v668_v15 = vpop.permute.xlu0 %667  ;;  %v924_v27 = vsel %vm565_vm2, %v904_v14, 0 }
 0x1e1   : > { %2080 = vmatprep.mubr.msk.bf16.mxu0 %vm565_vm2, %v668_v15 }
 0x1e2   : > { %2077 = vmatpush3.bf16.xpose.msra.mxu0 %v706_v16 }
 0x1e3   : > { %2222 = vmatprep.subr.msk.bf16.mxu0 %vm565_vm2, %v686_v13  ;;  %v674_v17 = vpop.permute.xlu1 %673 }
 0x1e4   : > { %v796_v18 = vpop.permute.xlu0 %795 }
 0x1e5   : > { %v818_v19 = vsel %vm565_vm2, %v796_v18, 0  ;;  %2225 = vmatprep.subr.msk.bf16.mxu1 %vm565_vm2, %v796_v18 }
 0x1e6   : > { %2093 = vmatpush3.bf16.xpose.msra.mxu1 %v818_v19 }
 0x1e7   : > { %v906_v22 = vpop.permute.xlu1 %905 }
 0x1e8   : > { %v672_v20 = vpop.permute.xlu0 %671  ;;  %v927_v31 = vsel %vm565_vm2, %v906_v22, 0 }
 0x1ea   : > { %2079 = vmatpush3.bf16.xpose.msra.mxu0 %v709_v21 }
 0x1eb   : > { %2227 = vmatprep.subr.msk.bf16.mxu0 %vm565_vm2, %v904_v14  ;;  %v786_v25 = vpop.permute.xlu1 %785 }
 0x1ec   : > { %v798_v23 = vpop.permute.xlu0 %797 }
 0x1ed   : > { %v821_v24 = vsel %vm565_vm2, %v798_v23, 0  ;;  %2226 = vmatprep.subr.msk.bf16.mxu1 %vm565_vm2, %v798_v23 }
 0x1ee   : > { %2095 = vmatpush3.bf16.xpose.msra.mxu1 %v821_v24 }
 0x1ef   : > { %2120 = vmatprep.subr.bf16.mxu1 %v2501_v59  ;;  %v788_v29 = vpop.permute.xlu1 %787 }
 0x1f0   : > { %v784_v26 = vpop.permute.xlu0 %783 }
 0x1f1   : > { %2081 = vmatmul.mubr.msk.bf16.vlgmr.msra.gmra.mrb[24].mxu0 %vm565_vm2, %v670_v11  ;;  %2096 = vmatprep.mubr.msk.bf16.mxu1 %vm565_vm2, %v784_v26 }
 0x1f2   : > { %2084 = vmatprep.mubr.msk.bf16.mxu0 %vm565_vm2, %v672_v20  ;;  %2105 = vmatpush3.bf16.xpose.msra.mxu0 %v924_v27 }
 0x1f3   : > { %2228 = vmatprep.subr.msk.bf16.mxu0 %vm565_vm2, %v906_v22  ;;  %v910_v35 = vpop.permute.xlu1 %909 }
 0x1f4   : > { %v908_v28 = vpop.permute.xlu0 %907  ;;  %v933_v36 = vsel %vm565_vm2, %v910_v35, 0 }
 0x1f5   : > { %2097 = vmatmul.mubr.msk.bf16.vlgmr.msra.gmra.mrb[8].mxu1 %vm565_vm2, %v786_v25  ;;  %v930_v34 = vsel %vm565_vm2, %v908_v28, 0 }
 0x1f6   : > { %2100 = vmatprep.mubr.msk.bf16.mxu1 %vm565_vm2, %v788_v29  ;;  %2121 = vmatpush3.bf16.msra.mxu1 %v2501_v59 }
 0x1f7   : > { %2122 = vmatprep.subr.bf16.mxu1 %v2499_v57  ;;  %v898_v37 = vpop.permute.xlu1 %897 }
 0x1f8   : > { %v790_v30 = vpop.permute.xlu0 %789 }
 0x1f9   : > { %2085 = vmatmul.mubr.msk.bf16.gmra.mrb[28].mxu0 %vm565_vm2, %v674_v17 }
 0x1fa   : > { %2107 = vmatpush3.bf16.xpose.msra.mxu0 %v927_v31  ;;  %2123 = vmatpush3.bf16.msra.mxu1 %v2499_v57 }
 0x1fb   : > { %2229 = vmatprep.subr.msk.bf16.mxu0 %vm565_vm2, %v908_v28  ;;  %2124 = vmatprep.subr.bf16.mxu1 %v2510_v1  ;;  %v902_v39 = vpop.permute.xlu1 %901 }
 0x1fc   : > { %v896_v33 = vpop.permute.xlu0 %895 }
 0x1fd   : > { %2101 = vmatmul.mubr.msk.bf16.gmra.mrb[12].mxu1 %vm565_vm2, %v790_v30  ;;  %2112 = vmatprep.mubr.msk.bf16.mxu0 %vm565_vm2, %v896_v33 }
 0x1fe   : > { %2125 = vmatpush3.bf16.msra.mxu1 %v2510_v1 }
 0x1ff   : > { %2126 = vmatprep.subr.bf16.mxu1 %v1408_v32  ;;  %v2590_v58 = vpop.permute.xlu1 %1491 }
 0x200   : > { %v900_v38 = vpop.permute.xlu0 %899 }
 0x202   : > { %2109 = vmatpush3.bf16.xpose.msra.mxu0 %v930_v34  ;;  %2127 = vmatpush3.bf16.msra.mxu1 %v1408_v32 }
 0x203   : > { %2230 = vmatprep.subr.msk.bf16.mxu0 %vm565_vm2, %v910_v35  ;;  %2136 = vmatprep.subr.bf16.mxu1 %v2590_v58 }
 0x20a   : > { %2111 = vmatpush3.bf16.xpose.msra.mxu0 %v933_v36 }
 0x211   : > { %2113 = vmatmul.mubr.msk.bf16.vlgmr.msra.gmra.mrb[32].mxu0 %vm565_vm2, %v898_v37 }
 0x212   : > { %2116 = vmatprep.mubr.msk.bf16.mxu0 %vm565_vm2, %v900_v38 }
 0x219   : > { %2117 = vmatmul.mubr.msk.bf16.gmra.mrb[36].mxu0 %vm565_vm2, %v902_v39 }
 0x251   : > { %v2066_v40 = vpop.f32.mrb[16].mxu0 }
 0x252   : > { %657 = vst.msk [vmem:[#allocation2 + $0x10] sm:$0xff] %vm654_vm3, %v2066_v40  ;;  %v624_v41 = vpop.f32.mrb[17].mxu0 }
 0x253   : > { %655 = vst.msk [vmem:[#allocation2] sm:$0xff] %vm654_vm3, %v624_v41  ;;  %v2067_v42 = vpop.f32.mrb[18].mxu0 }
 0x254   : > { %658 = vst.msk [vmem:[#allocation2 + $0x18] sm:$0xff] %vm654_vm3, %v2067_v42  ;;  %v627_v43 = vpop.f32.mrb[19].mxu0 }
 0x255   : > { %656 = vst.msk [vmem:[#allocation2 + $0x8] sm:$0xff] %vm654_vm3, %v627_v43 }
 0x259   : > { %v2070_v45 = vpop.f32.mrb[20].mxu0  ;;  %v1009_v46 = vld [vmem:[#allocation2 + $0x10] sm:$0xff] }
 0x25a   : > { %662 = vst.msk [vmem:[#allocation2 + $0x30] sm:$0x1] %vm661_vm4, %v2070_v45  ;;  %v640_v48 = vpop.f32.mrb[21].mxu0  ;;  %v2577_v49 = vmul.f32 %v2568_v44, %v1009_v46  ;;  %v1007_v51 = vld [vmem:[#allocation2] sm:$0xff] }
 0x25b   : > { %659 = vst.msk [vmem:[#allocation2 + $0x20] sm:$0xff] %vm654_vm3, %v640_v48  ;;  %v2071_v52 = vpop.f32.mrb[22].mxu0  ;;  %v2588_v56 = vmul.f32 %v2573_v47, %v1007_v51  ;;  %v1010_v62 = vld [vmem:[#allocation2 + $0x18] sm:$0xff] }
 0x25c   : > { %v643_v53 = vpop.f32.mrb[23].mxu0  ;;  %v1076_v54 = vsel %vm654_vm3, %v2577_v49, -inf  ;;  %v1008_v55 = vld [vmem:[#allocation2 + $0x8] sm:$0xff]  ;;  %v2612_v5 = vmul.f32 %v2599_v63, %v1010_v62 }
 0x25d   : > { %660 = vst.msk [vmem:[#allocation2 + $0x28] sm:$0xff] %vm654_vm3, %v643_v53  ;;  %1077 = vmax.xlane.f32.xlu0 %v1076_v54  ;;  %v2594_v60 = vmul.f32 %v2582_v50, %v1008_v55  ;;  %v1070_v3 = vsel %vm654_vm3, %v2588_v56, -inf }
 0x25e   : > { %v1079_v11 = vsel %vm654_vm3, %v2612_v5, -inf }
 0x25f   : > { %v1073_v0 = vsel %vm654_vm3, %v2594_v60, -inf }
 0x260   : > { %1074 = vmax.xlane.f32.xlu1 %v1073_v0 }
 0x261   : > { %1071 = vmax.xlane.f32.xlu0 %v1070_v3  ;;  %v1013_v6 = vld [vmem:[#allocation2 + $0x30] sm:$0x1] }
 0x262   : > { %v2620_v8 = vmul.f32 %v2607_v2, %v1013_v6  ;;  %v1011_v9 = vld [vmem:[#allocation2 + $0x20] sm:$0xff] }
 0x263   : > { %v2632_v13 = vmul.f32 %v2617_v7, %v1011_v9 }
 0x264   : > { %v1088_v12 = vsel %vm661_vm4, %v2620_v8, -inf  ;;  %v1012_v14 = vld [vmem:[#allocation2 + $0x28] sm:$0xff] }
 0x265   : > { %1080 = vmax.xlane.f32.xlu0 %v1079_v11  ;;  %1089 = vmax.xlane.f32.xlu1 %v1088_v12  ;;  %v2635_v15 = vmul.f32 %v2625_v10, %v1012_v14  ;;  %v1082_v17 = vsel %vm654_vm3, %v2632_v13, -inf }
 0x267   : > { %v1085_v16 = vsel %vm654_vm3, %v2635_v15, -inf }
 0x269   : > { %1083 = vmax.xlane.f32.xlu1 %v1082_v17  ;;  %1086 = vmax.xlane.f32.xlu0 %v1085_v16 }
 0x2c4   : > { %v2082_v18 = vpop.f32.mrb[24].mxu0 }
 0x2c5   : > { %778 = vst.msk [vmem:[#allocation2 + $0x48] sm:$0xff] %vm654_vm3, %v2082_v18  ;;  %v745_v19 = vpop.f32.mrb[25].mxu0 }
 0x2c6   : > { %776 = vst.msk [vmem:[#allocation2 + $0x38] sm:$0xff] %vm654_vm3, %v745_v19  ;;  %v2083_v20 = vpop.f32.mrb[26].mxu0 }
 0x2c7   : > { %779 = vst.msk [vmem:[#allocation2 + $0x50] sm:$0xff] %vm654_vm3, %v2083_v20  ;;  %v748_v21 = vpop.f32.mrb[27].mxu0 }
 0x2c8   : > { %777 = vst.msk [vmem:[#allocation2 + $0x40] sm:$0xff] %vm654_vm3, %v748_v21  ;;  %v2098_v22 = vpop.f32.mrb[8].mxu1 }
 0x2c9   : > { %890 = vst.msk [vmem:[#allocation2 + $0x80] sm:$0xff] %vm654_vm3, %v2098_v22  ;;  %v857_v23 = vpop.f32.mrb[9].mxu1 }
 0x2ca   : > { %888 = vst.msk [vmem:[#allocation2 + $0x70] sm:$0xff] %vm654_vm3, %v857_v23  ;;  %v2099_v24 = vpop.f32.mrb[10].mxu1 }
 0x2cb   : > { %891 = vst.msk [vmem:[#allocation2 + $0x88] sm:$0xff] %vm654_vm3, %v2099_v24  ;;  %v860_v25 = vpop.f32.mrb[11].mxu1 }
 0x2cc   : > { %889 = vst.msk [vmem:[#allocation2 + $0x78] sm:$0xff] %vm654_vm3, %v860_v25  ;;  %v2086_v26 = vpop.f32.mrb[28].mxu0  ;;  %v1016_v27 = vld [vmem:[#allocation2 + $0x48] sm:$0xff] }
 0x2cd   : > { %782 = vst.msk [vmem:[#allocation2 + $0x68] sm:$0x1] %vm661_vm4, %v2086_v26  ;;  %v761_v28 = vpop.f32.mrb[29].mxu0  ;;  %v2651_v29 = vmul.f32 %v2568_v44, %v1016_v27  ;;  %v1014_v30 = vld [vmem:[#allocation2 + $0x38] sm:$0xff] }
 0x2ce   : > { %780 = vst.msk [vmem:[#allocation2 + $0x58] sm:$0xff] %vm654_vm3, %v761_v28  ;;  %v2087_v31 = vpop.f32.mrb[30].mxu0  ;;  %v2657_v34 = vmul.f32 %v2573_v47, %v1014_v30  ;;  %v1017_v51 = vld [vmem:[#allocation2 + $0x50] sm:$0xff] }
 0x2cf   : > { %v764_v32 = vpop.f32.mrb[31].mxu0  ;;  %v1097_v33 = vsel %vm654_vm3, %v2651_v29, -inf  ;;  %v2681_v55 = vmul.f32 %v2599_v63, %v1017_v51  ;;  %v1015_v0 = vld [vmem:[#allocation2 + $0x40] sm:$0xff] }
 0x2d0   : > { %781 = vst.msk [vmem:[#allocation2 + $0x60] sm:$0xff] %vm654_vm3, %v764_v32  ;;  %v2102_v35 = vpop.f32.mrb[12].mxu1  ;;  %1098 = vmax.xlane.f32.xlu0 %v1097_v33  ;;  %v1023_v36 = vld [vmem:[#allocation2 + $0x80] sm:$0xff]  ;;  %v1091_v45 = vsel %vm654_vm3, %v2657_v34, -inf  ;;  %v2691_v11 = vmul.f32 %v2582_v50, %v1015_v0 }
 0x2d1   : > { %894 = vst.msk [vmem:[#allocation2 + $0xa0] sm:$0x1] %vm661_vm4, %v2102_v35  ;;  %v873_v37 = vpop.f32.mrb[13].mxu1  ;;  %v2662_v38 = vmul.f32 %v2568_v44, %v1023_v36  ;;  %v1021_v39 = vld [vmem:[#allocation2 + $0x70] sm:$0xff]  ;;  %v1100_v6 = vsel %vm654_vm3, %v2681_v55, -inf }
 0x2d2   : > { %892 = vst.msk [vmem:[#allocation2 + $0x90] sm:$0xff] %vm654_vm3, %v873_v37  ;;  %v2103_v40 = vpop.f32.mrb[14].mxu1  ;;  %v1024_v41 = vld [vmem:[#allocation2 + $0x88] sm:$0xff]  ;;  %v2670_v46 = vmul.f32 %v2573_v47, %v1021_v39  ;;  %v1094_v17 = vsel %vm654_vm3, %v2691_v11, -inf }
 0x2d3   : > { %v876_v42 = vpop.f32.mrb[15].mxu1  ;;  %v1118_v43 = vsel %vm654_vm3, %v2662_v38, -inf  ;;  %v2673_v48 = vmul.f32 %v2599_v63, %v1024_v41  ;;  %v1022_v52 = vld [vmem:[#allocation2 + $0x78] sm:$0xff] }
 0x2d4   : > { %893 = vst.msk [vmem:[#allocation2 + $0x98] sm:$0xff] %vm654_vm3, %v876_v42  ;;  %1119 = vmax.xlane.f32.xlu1 %v1118_v43  ;;  %1092 = vmax.xlane.f32.xlu0 %v1091_v45  ;;  %v1112_v53 = vsel %vm654_vm3, %v2670_v46, -inf  ;;  %v2684_v62 = vmul.f32 %v2582_v50, %v1022_v52  ;;  %v1020_v3 = vld [vmem:[#allocation2 + $0x68] sm:$0x1] }
 0x2d5   : > { %v1121_v54 = vsel %vm654_vm3, %v2673_v48, -inf  ;;  %v2694_v12 = vmul.f32 %v2607_v2, %v1020_v3  ;;  %v1018_v16 = vld [vmem:[#allocation2 + $0x58] sm:$0xff] }
 0x2d6   : > { %v1115_v9 = vsel %vm654_vm3, %v2684_v62, -inf  ;;  %v2704_v20 = vmul.f32 %v2617_v7, %v1018_v16 }
 0x2d7   : > { %v1109_v18 = vsel %vm661_vm4, %v2694_v12, -inf  ;;  %v1019_v28 = vld [vmem:[#allocation2 + $0x60] sm:$0xff] }
 0x2d8   : > { %1113 = vmax.xlane.f32.xlu1 %v1112_v53  ;;  %1122 = vmax.xlane.f32.xlu0 %v1121_v54  ;;  %v1027_v14 = vld [vmem:[#allocation2 + $0xa0] sm:$0x1]  ;;  %v1103_v24 = vsel %vm654_vm3, %v2704_v20, -inf  ;;  %v2724_v36 = vmul.f32 %v2625_v10, %v1019_v28 }
 0x2d9   : > { %v2701_v19 = vmul.f32 %v2607_v2, %v1027_v14  ;;  %v1025_v21 = vld [vmem:[#allocation2 + $0x90] sm:$0xff] }
 0x2da   : > { %v2711_v25 = vmul.f32 %v2617_v7, %v1025_v21  ;;  %v1106_v37 = vsel %vm654_vm3, %v2724_v36, -inf }
 0x2db   : > { %v1026_v22 = vld [vmem:[#allocation2 + $0x98] sm:$0xff]  ;;  %v1130_v23 = vsel %vm661_vm4, %v2701_v19, -inf }
 0x2dc   : > { %1101 = vmax.xlane.f32.xlu1 %v1100_v6  ;;  %1116 = vmax.xlane.f32.xlu0 %v1115_v9  ;;  %v2714_v26 = vmul.f32 %v2625_v10, %v1026_v22  ;;  %v1124_v33 = vsel %vm654_vm3, %v2711_v25, -inf }
 0x2de   : > { %v1127_v35 = vsel %vm654_vm3, %v2714_v26, -inf }
 0x2e0   : > { %1095 = vmax.xlane.f32.xlu1 %v1094_v17  ;;  %1110 = vmax.xlane.f32.xlu0 %v1109_v18 }
 0x2e4   : > { %1131 = vmax.xlane.f32.xlu1 %v1130_v23  ;;  %v2114_v27 = vpop.f32.mrb[32].mxu0  ;;  %1104 = vmax.xlane.f32.xlu0 %v1103_v24  ;;  %v2767_v23 = vpop.permute.xlu0 %1590 }
 0x2e5   : > { %1002 = vst.msk [vmem:[#allocation2 + $0xb8] sm:$0xff] %vm654_vm3, %v2114_v27  ;;  %v969_v30 = vpop.f32.mrb[33].mxu0  ;;  %v2771_v27 = vpop.permute.xlu1 %1493 }
 0x2e6   : > { %1000 = vst.msk [vmem:[#allocation2 + $0xa8] sm:$0xff] %vm654_vm3, %v969_v30  ;;  %v2115_v31 = vpop.f32.mrb[34].mxu0 }
 0x2e7   : > { %1003 = vst.msk [vmem:[#allocation2 + $0xc0] sm:$0xff] %vm654_vm3, %v2115_v31  ;;  %v972_v32 = vpop.f32.mrb[35].mxu0 }
 0x2e8   : > { %1001 = vst.msk [vmem:[#allocation2 + $0xb0] sm:$0xff] %vm654_vm3, %v972_v32  ;;  %1125 = vmax.xlane.f32.xlu1 %v1124_v33  ;;  %1128 = vmax.xlane.f32.xlu0 %v1127_v35  ;;  %v2769_v24 = vpop.permute.xlu0 %1495 }
 0x2e9   : > { %v2775_v28 = vpop.permute.xlu1 %1497 }
 0x2ec   : > { %v2118_v39 = vpop.f32.mrb[36].mxu0  ;;  %1107 = vmax.xlane.f32.xlu1 %v1106_v37  ;;  %v1030_v40 = vld [vmem:[#allocation2 + $0xb8] sm:$0xff] }
 0x2ed   : > { %1006 = vst.msk [vmem:[#allocation2 + $0xd8] sm:$0x1] %vm661_vm4, %v2118_v39  ;;  %v985_v41 = vpop.f32.mrb[37].mxu0  ;;  %v2731_v42 = vmul.f32 %v2568_v44, %v1030_v40  ;;  %v1028_v43 = vld [vmem:[#allocation2 + $0xa8] sm:$0xff]  ;;  %v2779_v30 = vpop.permute.xlu1 %1588 }
 0x2ee   : > { %1004 = vst.msk [vmem:[#allocation2 + $0xc8] sm:$0xff] %vm654_vm3, %v985_v41  ;;  %v2119_v45 = vpop.f32.mrb[38].mxu0  ;;  %v1031_v51 = vld [vmem:[#allocation2 + $0xc0] sm:$0xff]  ;;  %v2740_v0 = vmul.f32 %v2573_v47, %v1028_v43 }
 0x2ef   : > { %v988_v52 = vpop.f32.mrb[39].mxu0  ;;  %v1139_v53 = vsel %vm654_vm3, %v2731_v42, -inf  ;;  %v2737_v54 = vmul.f32 %v2599_v63, %v1031_v51  ;;  %v1029_v3 = vld [vmem:[#allocation2 + $0xb0] sm:$0xff] }
 0x2f0   : > { %1005 = vst.msk [vmem:[#allocation2 + $0xd0] sm:$0xff] %vm654_vm3, %v988_v52  ;;  %1140 = vmax.xlane.f32.xlu0 %v1139_v53  ;;  %v2746_v6 = vmul.f32 %v2582_v50, %v1029_v3  ;;  %v1133_v9 = vsel %vm654_vm3, %v2740_v0, -inf }
 0x2f1   : > { %v1142_v44 = vsel %vm654_vm3, %v2737_v54, -inf  ;;  %v1075_v32 = vpop.xlane.xlu1 %1074 }
 0x2f2   : > { %1143 = vmax.xlane.f32.xlu1 %v1142_v44  ;;  %v1136_v47 = vsel %vm654_vm3, %v2746_v6, -inf }
 0x2f4   : > { %1134 = vmax.xlane.f32.xlu0 %v1133_v9  ;;  %v1034_v63 = vld [vmem:[#allocation2 + $0xd8] sm:$0x1] }
 0x2f5   : > { %v2753_v14 = vmul.f32 %v2607_v2, %v1034_v63  ;;  %v1032_v16 = vld [vmem:[#allocation2 + $0xc8] sm:$0xff]  ;;  %v1090_v37 = vpop.xlane.xlu1 %1089 }
 0x2f6   : > { %1137 = vmax.xlane.f32.xlu1 %v1136_v47  ;;  %v2758_v50 = vmul.f32 %v2617_v7, %v1032_v16  ;;  %v2773_v7 = vpop.permute.xlu0 %1592  ;;  %v1160_v45 = vsub.f32 %v2620_v8, %v1090_v37 }
 0x2f7   : > { %v1151_v17 = vsel %vm661_vm4, %v2753_v14, -inf  ;;  %v1033_v18 = vld [vmem:[#allocation2 + $0xd0] sm:$0xff] }
 0x2f8   : > { %1152 = vmax.xlane.f32.xlu0 %v1151_v17  ;;  %v2761_v21 = vmul.f32 %v2625_v10, %v1033_v18  ;;  %v1145_v2 = vsel %vm654_vm3, %v2758_v50, -inf }
 0x2f9   : > { %v1084_v52 = vpop.xlane.xlu1 %1083 }
 0x2fa   : > { %v1148_v22 = vsel %vm654_vm3, %v2761_v21, -inf  ;;  %v1078_v10 = vpop.xlane.xlu0 %1077 }
 0x2fb   : > { %1149 = vmax.xlane.f32.xlu1 %v1148_v22  ;;  %v1156_v33 = vsub.f32 %v2577_v49, %v1078_v10  ;;  %v1158_v49 = vsub.f32 %v2632_v13, %v1084_v52 }
 0x2fc   : > { %1146 = vmax.xlane.f32.xlu0 %v1145_v2 }
 0x2fd   : > { %v1186_v39 = vmul.f32 1.442695, %v1156_v33 }
 0x2fe   : > { %v1072_v31 = vpop.xlane.xlu0 %1071 }
 0x2ff   : > { %v1154_v40 = vsub.f32 %v2588_v56, %v1072_v31  ;;  %2264 = vpow2.f32 %v1186_v39  ;;  %v1190_v56 = vmul.f32 1.442695, %v1158_v49 }
 0x301   : > { %v1182_v43 = vmul.f32 1.442695, %v1154_v40 }
 0x302   : > { %v1081_v35 = vpop.xlane.xlu0 %1080 }
 0x303   : > { %v1157_v41 = vsub.f32 %v2612_v5, %v1081_v35  ;;  %2266 = vpow2.f32 %v1182_v43 }
 0x305   : > { %v1188_v51 = vmul.f32 1.442695, %v1157_v41 }
 0x306   : > { %v1087_v53 = vpop.xlane.xlu0 %1086 }
 0x307   : > { %2268 = vpow2.f32 %v1188_v51  ;;  %v1159_v44 = vsub.f32 %v2635_v15, %v1087_v53 }
 0x309   : > { %v1192_v5 = vmul.f32 1.442695, %v1159_v44  ;;  %v2792_v9 = vpop.eup %2264 }
 0x30c   : > { %1594 = vrot.lane.b32.xlu1 %v2507_v61, %s2387_s29  ;;  %s197_s29 = scalar_lea.vmem %s3019_s4, %s2232_s24 }
 0x30d   : > { %v2796_v8 = vpop.eup %2266 }
 0x30e   : > { %v1238_v13 = vsel %vm654_vm3, %v2796_v8, 0.0 }
 0x311   : > { %v2798_v63 = vpop.eup %2268 }
 0x312   : > { %1685 = vrot.lane.b32.xlu0 %v2501_v59, %s2391_s23  ;;  %v1155_v59 = vsub.f32 %v2594_v60, %v1075_v32  ;;  %v1244_v60 = vsel %vm654_vm3, %v2792_v9, 0.0  ;;  %v1247_v47 = vsel %vm654_vm3, %v2798_v63, 0.0 }
 0x314   : > { %v1184_v3 = vmul.f32 1.442695, %v1155_v59 }
 0x316   : > { %1687 = vrot.lane.b32.xlu0 %v2499_v57, %s2391_s23  ;;  %v1194_v57 = vmul.f32 1.442695, %v1160_v45 }
 0x318   : > { %2270 = vpow2.f32 %v1194_v57 }
 0x319   : > { %2272 = vpow2.f32 %v1184_v3 }
 0x31a   : > { %2274 = vpow2.f32 %v1190_v56 }
 0x31b   : > { %2276 = vpow2.f32 %v1192_v5 }
 0x322   : > { %v2802_v15 = vpop.eup %2270 }
 0x323   : > { %v2806_v16 = vpop.eup %2272  ;;  %v1256_v17 = vsel %vm661_vm4, %v2802_v15, 0.0 }
 0x324   : > { %v2810_v18 = vpop.eup %2274  ;;  %v1241_v22 = vsel %vm654_vm3, %v2806_v16, 0.0 }
 0x325   : > { %v2814_v2 = vpop.eup %2276  ;;  %v1250_v10 = vsel %vm654_vm3, %v2810_v18, 0.0 }
 0x326   : > { %v1253_v31 = vsel %vm654_vm3, %v2814_v2, 0.0 }
 0x330   : > { %1245 = vadd.xlane.f32.xlu1 %v1244_v60 }
 0x334   : > { %1239 = vadd.xlane.f32.xlu1 %v1238_v13 }
 0x335   : > { %1248 = vadd.xlane.f32.xlu0 %v1247_v47 }
 0x338   : > { %1257 = vadd.xlane.f32.xlu1 %v1256_v17 }
 0x339   : > { %1242 = vadd.xlane.f32.xlu0 %v1241_v22 }
 0x33c   : > { %1251 = vadd.xlane.f32.xlu1 %v1250_v10 }
 0x33d   : > { %1254 = vadd.xlane.f32.xlu0 %v1253_v31 }
 0x35d   : > { %v1099_v32 = vpop.xlane.xlu0 %1098 }
 0x35e   : > { %v1163_v33 = vsub.f32 %v2651_v29, %v1099_v32 }
 0x360   : > { %v1200_v35 = vmul.f32 1.442695, %v1163_v33 }
 0x361   : > { %v1120_v37 = vpop.xlane.xlu1 %1119  ;;  %v1093_v39 = vpop.xlane.xlu0 %1092 }
 0x362   : > { %2278 = vpow2.f32 %v1200_v35  ;;  %v1170_v40 = vsub.f32 %v2662_v38, %v1120_v37  ;;  %v1161_v41 = vsub.f32 %v2657_v34, %v1093_v39 }
 0x364   : > { %v1214_v43 = vmul.f32 1.442695, %v1170_v40  ;;  %v1196_v45 = vmul.f32 1.442695, %v1161_v41 }
 0x365   : > { %v1114_v59 = vpop.xlane.xlu1 %1113  ;;  %v1123_v51 = vpop.xlane.xlu0 %1122 }
 0x366   : > { %2280 = vpow2.f32 %v1214_v43  ;;  %v1168_v52 = vsub.f32 %v2670_v46, %v1114_v59  ;;  %v1171_v57 = vsub.f32 %v2673_v48, %v1123_v51 }
 0x367   : > { %2282 = vpow2.f32 %v1196_v45 }
 0x368   : > { %v1210_v53 = vmul.f32 1.442695, %v1168_v52  ;;  %v1216_v38 = vmul.f32 1.442695, %v1171_v57 }
 0x369   : > { %v1102_v29 = vpop.xlane.xlu1 %1101  ;;  %v1117_v49 = vpop.xlane.xlu0 %1116 }
 0x36a   : > { %v1164_v3 = vsub.f32 %v2681_v55, %v1102_v29  ;;  %2284 = vpow2.f32 %v1210_v53  ;;  %v1169_v56 = vsub.f32 %v2684_v62, %v1117_v49 }
 0x36c   : > { %v2826_v44 = vpop.eup %2278  ;;  %v1202_v34 = vmul.f32 1.442695, %v1164_v3  ;;  %v1212_v55 = vmul.f32 1.442695, %v1169_v56 }
 0x36d   : > { %v1096_v5 = vpop.xlane.xlu1 %1095  ;;  %v1111_v60 = vpop.xlane.xlu0 %1110  ;;  %v1265_v46 = vsel %vm654_vm3, %v2826_v44, 0.0 }
 0x36e   : > { %2286 = vpow2.f32 %v1202_v34  ;;  %v1162_v13 = vsub.f32 %v2691_v11, %v1096_v5  ;;  %1266 = vadd.xlane.f32.xlu0 %v1265_v46  ;;  %v1167_v17 = vsub.f32 %v2694_v12, %v1111_v60 }
 0x36f   : > { %2288 = vpow2.f32 %v1216_v38 }
 0x370   : > { %v2832_v48 = vpop.eup %2280  ;;  %v1198_v47 = vmul.f32 1.442695, %v1162_v13  ;;  %v1208_v32 = vmul.f32 1.442695, %v1167_v17 }
 0x371   : > { %v1132_v22 = vpop.xlane.xlu1 %1131  ;;  %v1286_v62 = vsel %vm654_vm3, %v2832_v48, 0.0  ;;  %v2837_v10 = vpop.eup %2282 }
 0x372   : > { %2290 = vpow2.f32 %v1198_v47  ;;  %1287 = vadd.xlane.f32.xlu0 %v1286_v62  ;;  %v1105_v31 = vpop.xlane.xlu0 %1104  ;;  %v1174_v11 = vsub.f32 %v2701_v19, %v1132_v22  ;;  %v1259_v35 = vsel %vm654_vm3, %v2837_v10, 0.0 }
 0x373   : > { %2292 = vpow2.f32 %v1212_v55  ;;  %v1165_v41 = vsub.f32 %v2704_v20, %v1105_v31 }
 0x374   : > { %v2842_v37 = vpop.eup %2284  ;;  %2294 = vpow2.f32 %v1208_v32  ;;  %v1222_v40 = vmul.f32 1.442695, %v1174_v11 }
 0x375   : > { %v1126_v33 = vpop.xlane.xlu1 %1125  ;;  %v1280_v51 = vsel %vm654_vm3, %v2842_v37, 0.0  ;;  %v1204_v20 = vmul.f32 1.442695, %v1165_v41 }
 0x376   : > { %v1172_v12 = vsub.f32 %v2711_v25, %v1126_v33  ;;  %1260 = vadd.xlane.f32.xlu0 %v1259_v35  ;;  %v1129_v45 = vpop.xlane.xlu0 %1128 }
 0x377   : > { %v1173_v57 = vsub.f32 %v2714_v26, %v1129_v45 }
 0x378   : > { %v2845_v39 = vpop.eup %2286  ;;  %v1218_v43 = vmul.f32 1.442695, %v1172_v12 }
 0x379   : > { %v1108_v59 = vpop.xlane.xlu1 %1107  ;;  %v1268_v19 = vsel %vm654_vm3, %v2845_v39, 0.0  ;;  %v2852_v52 = vpop.eup %2288  ;;  %v1220_v5 = vmul.f32 1.442695, %v1173_v57 }
 0x37a   : > { %2296 = vpow2.f32 %v1218_v43  ;;  %v1166_v25 = vsub.f32 %v2724_v36, %v1108_v59  ;;  %1269 = vadd.xlane.f32.xlu1 %v1268_v19  ;;  %1281 = vadd.xlane.f32.xlu0 %v1280_v51  ;;  %v1289_v38 = vsel %vm654_vm3, %v2852_v52, 0.0 }
 0x37b   : > { %2298 = vpow2.f32 %v1222_v40 }
 0x37c   : > { %v2855_v53 = vpop.eup %2290  ;;  %v1206_v29 = vmul.f32 1.442695, %v1166_v25 }
 0x37d   : > { %v1141_v49 = vpop.xlane.xlu0 %1140  ;;  %v1262_v3 = vsel %vm654_vm3, %v2855_v53, 0.0  ;;  %v2862_v34 = vpop.eup %2292 }
 0x37e   : > { %2300 = vpow2.f32 %v1206_v29  ;;  %1263 = vadd.xlane.f32.xlu1 %v1262_v3  ;;  %1290 = vadd.xlane.f32.xlu0 %v1289_v38  ;;  %v1177_v36 = vsub.f32 %v2731_v42, %v1141_v49  ;;  %v1283_v26 = vsel %vm654_vm3, %v2862_v34, 0.0  ;;  %v2867_v46 = vpop.eup %2294 }
 0x37f   : > { %v1144_v56 = vpop.xlane.xlu1 %1143  ;;  %2302 = vpow2.f32 %v1204_v20  ;;  %v1277_v31 = vsel %vm661_vm4, %v2867_v46, 0.0 }
 0x380   : > { %v1228_v13 = vmul.f32 1.442695, %v1177_v36  ;;  %2304 = vpow2.f32 %v1220_v5 }
 0x381   : > { %v1135_v60 = vpop.xlane.xlu0 %1134 }
 0x382   : > { %1284 = vadd.xlane.f32.xlu0 %v1283_v26  ;;  %v1175_v17 = vsub.f32 %v2740_v0, %v1135_v60  ;;  %2306 = vpow2.f32 %v1228_v13  ;;  %v1178_v0 = vsub.f32 %v2737_v54, %v1144_v56 }
 0x383   : > { %v1138_v55 = vpop.xlane.xlu1 %1137 }
 0x384   : > { %v2869_v47 = vpop.eup %2296  ;;  %v1176_v22 = vsub.f32 %v2746_v6, %v1138_v55  ;;  %v1224_v6 = vmul.f32 1.442695, %v1175_v17  ;;  %v1230_v54 = vmul.f32 1.442695, %v1178_v0 }
 0x385   : > { %v1153_v42 = vpop.xlane.xlu0 %1152  ;;  %v1292_v62 = vsel %vm654_vm3, %v2869_v47, 0.0  ;;  %v2877_v32 = vpop.eup %2298 }
 0x386   : > { %v1226_v11 = vmul.f32 1.442695, %v1176_v22  ;;  %v1181_v33 = vsub.f32 %v2753_v14, %v1153_v42  ;;  %1293 = vadd.xlane.f32.xlu1 %v1292_v62  ;;  %1278 = vadd.xlane.f32.xlu0 %v1277_v31  ;;  %v1298_v14 = vsel %vm661_vm4, %v2877_v32, 0.0 }
 0x388   : > { %v2880_v35 = vpop.eup %2300  ;;  %2308 = vpow2.f32 %v1226_v11  ;;  %v1236_v12 = vmul.f32 1.442695, %v1181_v33  ;;  %v1150_v40 = vpop.xlane.xlu1 %1149 }
 0x389   : > { %v1180_v41 = vsub.f32 %v2761_v21, %v1150_v40  ;;  %v1147_v43 = vpop.xlane.xlu0 %1146  ;;  %v1274_v45 = vsel %vm654_vm3, %v2880_v35, 0.0  ;;  %v2888_v59 = vpop.eup %2302 }
 0x38a   : > { %2310 = vpow2.f32 %v1236_v12  ;;  %1275 = vadd.xlane.f32.xlu1 %v1274_v45  ;;  %1299 = vadd.xlane.f32.xlu0 %v1298_v14  ;;  %v1179_v51 = vsub.f32 %v2758_v50, %v1147_v43  ;;  %v1271_v21 = vsel %vm654_vm3, %v2888_v59, 0.0  ;;  %v2893_v25 = vpop.eup %2304 }
 0x38b   : > { %v1234_v19 = vmul.f32 1.442695, %v1180_v41  ;;  %2312 = vpow2.f32 %v1224_v6  ;;  %v1295_v29 = vsel %vm654_vm3, %v2893_v25, 0.0 }
 0x38c   : > { %v1232_v20 = vmul.f32 1.442695, %v1179_v51  ;;  %v2895_v57 = vpop.eup %2306  ;;  %v2931_v62 = vpop.permute.xlu1 %1594 }
 0x38d   : > { %2314 = vpow2.f32 %v1234_v19  ;;  %v1307_v38 = vsel %vm654_vm3, %v2895_v57, 0.0  ;;  %v2927_v42 = vpop.permute.xlu0 %1685 }
 0x38e   : > { %1272 = vadd.xlane.f32.xlu0 %v1271_v21  ;;  %2316 = vpow2.f32 %v1230_v54 }
 0x38f   : > { %2318 = vpow2.f32 %v1232_v20 }
 0x391   : > { %v2933_v11 = vpop.permute.xlu0 %1687 }
 0x392   : > { %v2899_v49 = vpop.eup %2308  ;;  %1296 = vadd.xlane.f32.xlu0 %v1295_v29 }
 0x393   : > { %v1304_v50 = vsel %vm654_vm3, %v2899_v49, 0.0 }
 0x394   : > { %v2903_v3 = vpop.eup %2310  ;;  %1305 = vadd.xlane.f32.xlu1 %v1304_v50 }
 0x395   : > { %v2907_v36 = vpop.eup %2312  ;;  %v1319_v56 = vsel %vm661_vm4, %v2903_v3, 0.0 }
 0x396   : > { %1308 = vadd.xlane.f32.xlu0 %v1307_v38  ;;  %v1301_v60 = vsel %vm654_vm3, %v2907_v36, 0.0 }
 0x397   : > { %v2911_v5 = vpop.eup %2314 }
 0x398   : > { %1320 = vadd.xlane.f32.xlu1 %v1319_v56  ;;  %v2915_v26 = vpop.eup %2316  ;;  %v1316_v13 = vsel %vm654_vm3, %v2911_v5, 0.0 }
 0x399   : > { %v1310_v55 = vsel %vm654_vm3, %v2915_v26, 0.0  ;;  %v2921_v17 = vpop.eup %2318 }
 0x39a   : > { %1302 = vadd.xlane.f32.xlu0 %v1301_v60  ;;  %v1313_v22 = vsel %vm654_vm3, %v2921_v17, 0.0 }
 0x39c   : > { %1317 = vadd.xlane.f32.xlu1 %v1316_v13 }
 0x39e   : > { %1311 = vadd.xlane.f32.xlu0 %v1310_v55 }
 0x3a2   : > { %1314 = vadd.xlane.f32.xlu0 %v1313_v22 }
 0x3ad   : > { %1691 = vrot.lane.b32.xlu1 %v2507_v61, %s2391_s23 }
 0x3b8   : > { %1689 = vrot.lane.b32.xlu0 %v2510_v1, %s2391_s23 }
 0x3bd   : > { %v1246_v31 = vpop.xlane.xlu1 %1245 }
 0x3c1   : > { %v1240_v33 = vpop.xlane.xlu1 %1239 }
 0x3c2   : > { %v1249_v0 = vpop.xlane.xlu0 %1248 }
 0x3c3   : > { %2320 = vrcp.f32 %v1249_v0 }
 0x3c4   : > { %2322 = vrcp.f32 %v1240_v33 }
 0x3c5   : > { %v1258_v6 = vpop.xlane.xlu1 %1257  ;;  %2324 = vrcp.f32 %v1246_v31 }
 0x3c6   : > { %v1243_v12 = vpop.xlane.xlu0 %1242 }
 0x3c7   : > { %2326 = vrcp.f32 %v1243_v12 }
 0x3c9   : > { %v1252_v40 = vpop.xlane.xlu1 %1251 }
 0x3ca   : > { %2328 = vrcp.f32 %v1252_v40  ;;  %v1255_v61 = vpop.xlane.xlu0 %1254 }
 0x3cb   : > { %2330 = vrcp.f32 %v1255_v61 }
 0x3cc   : > { %2332 = vrcp.f32 %v1258_v6 }
 0x3cd   : > { %v2321_v41 = vpop.eup %2320 }
 0x3ce   : > { %v2323_v1 = vpop.eup %2322  ;;  %v1353_v14 = vmul.f32 %v2321_v41, %v2798_v63 }
 0x3cf   : > { %v2325_v43 = vpop.eup %2324  ;;  %v1350_v19 = vmul.f32 %v2323_v1, %v2796_v8 }
 0x3d0   : > { %v1352_v51 = vmul.f32 %v2325_v43, %v2792_v9 }
 0x3d1   : > { %v2327_v45 = vpop.eup %2326 }
 0x3d2   : > { %v1351_v54 = vmul.f32 %v2327_v45, %v2806_v16  ;;  %v1379_v50 = vpack.c.bf16 %v1353_v14, %v1352_v51  ;;  %v1515_v16 = vand.u32 %v2775_v28, %v2434_v4  ;;  %v1612_v51 = vand.u32 %v2931_v62, %v2434_v4 }
 0x3d4   : > { %v2329_v21 = vpop.eup %2328  ;;  %v1378_v20 = vpack.c.bf16 %v1351_v54, %v1350_v19 }
 0x3d5   : > { %v2331_v29 = vpop.eup %2330  ;;  %v1354_v38 = vmul.f32 %v2329_v21, %v2810_v18 }
 0x3d6   : > { %v2333_v56 = vpop.eup %2332  ;;  %2128 = vmatprep.mubr.msk.bf16.mxu1 %vm654_vm3, %v1378_v20  ;;  %v1355_v60 = vmul.f32 %v2331_v29, %v2814_v2 }
 0x3d7   : > { %2129 = vmatmul.mubr.msk.bf16.vlgmr.msra.gmra.mrb[16].mxu1 %vm654_vm3, %v1379_v50  ;;  %v1356_v9 = vmul.f32 %v2333_v56, %v2802_v15 }
 0x3d8   : > { %2137 = vmatpush3.bf16.msra.mxu1 %v2590_v58  ;;  %v1380_v8 = vpack.c.bf16 %v1355_v60, %v1354_v38 }
 0x3d9   : > { %2138 = vmatprep.subr.bf16.mxu1 %v2771_v27  ;;  %v1381_v63 = vpack.c.bf16 %v1356_v9, %v1356_v9 }
 0x3da   : > { %2132 = vmatprep.mubr.msk.bf16.mxu1 %vm654_vm3, %v1380_v8 }
 0x3dc   : > { %2139 = vmatpush3.bf16.msra.mxu1 %v2771_v27 }
 0x3dd   : > { %2140 = vmatprep.subr.bf16.mxu1 %v2769_v24 }
 0x3df   : > { %2133 = vmatmul.mubr.msk.bf16.gmra.mrb[20].mxu1 %vm654_vm3, %v1381_v63 }
 0x3e0   : > { %2141 = vmatpush3.bf16.msra.mxu1 %v2769_v24 }
 0x3e1   : > { %2142 = vmatprep.subr.bf16.mxu1 %v1515_v16 }
 0x3e4   : > { %2143 = vmatpush3.bf16.msra.mxu1 %v1515_v16 }
 0x3e5   : > { %2152 = vmatprep.subr.bf16.mxu1 %v2779_v30 }
 0x3fb   : > { %v1267_v58 = vpop.xlane.xlu0 %1266 }
 0x3ff   : > { %v1288_v15 = vpop.xlane.xlu0 %1287 }
 0x403   : > { %v1261_v18 = vpop.xlane.xlu0 %1260 }
 0x407   : > { %v1270_v2 = vpop.xlane.xlu1 %1269  ;;  %v1282_v13 = vpop.xlane.xlu0 %1281 }
 0x408   : > { %2334 = vrcp.f32 %v1270_v2 }
 0x409   : > { %2336 = vrcp.f32 %v1261_v18 }
 0x40a   : > { %2338 = vrcp.f32 %v1267_v58 }
 0x40b   : > { %v1264_v27 = vpop.xlane.xlu1 %1263  ;;  %v1291_v55 = vpop.xlane.xlu0 %1290 }
 0x40c   : > { %2340 = vrcp.f32 %v1264_v27 }
 0x40f   : > { %v1285_v28 = vpop.xlane.xlu0 %1284 }
 0x410   : > { %2342 = vrcp.f32 %v1285_v28 }
 0x412   : > { %v2335_v22 = vpop.eup %2334 }
 0x413   : > { %v1294_v31 = vpop.xlane.xlu1 %1293  ;;  %v1279_v33 = vpop.xlane.xlu0 %1278  ;;  %v1360_v12 = vmul.f32 %v2335_v22, %v2845_v39 }
 0x414   : > { %v2337_v24 = vpop.eup %2336  ;;  %2344 = vrcp.f32 %v1279_v33 }
 0x415   : > { %v2339_v0 = vpop.eup %2338  ;;  %v1357_v41 = vmul.f32 %v2337_v24, %v2837_v10 }
 0x416   : > { %v2341_v6 = vpop.eup %2340  ;;  %v1359_v43 = vmul.f32 %v2339_v0, %v2826_v44 }
 0x417   : > { %v1276_v40 = vpop.xlane.xlu1 %1275  ;;  %v1300_v61 = vpop.xlane.xlu0 %1299  ;;  %v1358_v1 = vmul.f32 %v2341_v6, %v2855_v53 }
 0x418   : > { %v1383_v14 = vpack.c.bf16 %v1360_v12, %v1359_v43  ;;  %2346 = vrcp.f32 %v1276_v40 }
 0x419   : > { %v1382_v45 = vpack.c.bf16 %v1358_v1, %v1357_v41  ;;  %2348 = vrcp.f32 %v1282_v13 }
 0x41a   : > { %v2343_v44 = vpop.eup %2342 }
 0x41b   : > { %2144 = vmatprep.mubr.msk.bf16.mxu1 %vm654_vm3, %v1382_v45  ;;  %v1273_v19 = vpop.xlane.xlu0 %1272  ;;  %v1365_v56 = vmul.f32 %v2343_v44, %v2862_v34 }
 0x41c   : > { %2350 = vrcp.f32 %v1273_v19  ;;  %2145 = vmatmul.mubr.msk.bf16.vlgmr.msra.gmra.mrb[16].mxu1 %vm654_vm3, %v1383_v14 }
 0x41d   : > { %2153 = vmatpush3.bf16.msra.mxu1 %v2779_v30  ;;  %2352 = vrcp.f32 %v1291_v55 }
 0x41e   : > { %2154 = vmatprep.subr.bf16.mxu1 %v2767_v23  ;;  %v2345_v39 = vpop.eup %2344 }
 0x41f   : > { %v1297_v10 = vpop.xlane.xlu0 %1296 }
 0x420   : > { %2354 = vrcp.f32 %v1297_v10 }
 0x421   : > { %2155 = vmatpush3.bf16.msra.mxu1 %v2767_v23  ;;  %2356 = vrcp.f32 %v1288_v15  ;;  %v1306_v30 = vpop.xlane.xlu1 %1305  ;;  %v1363_v23 = vmul.f32 %v2345_v39, %v2867_v46 }
 0x422   : > { %2156 = vmatprep.subr.bf16.mxu1 %v2773_v7  ;;  %v2347_v54 = vpop.eup %2346  ;;  %2358 = vrcp.f32 %v1294_v31 }
 0x423   : > { %v1309_v53 = vpop.xlane.xlu0 %1308  ;;  %v2349_v21 = vpop.eup %2348  ;;  %v1362_v38 = vmul.f32 %v2347_v54, %v2880_v35  ;;  %2360 = vrcp.f32 %v1300_v61 }
 0x424   : > { %v1364_v62 = vmul.f32 %v2349_v21, %v2842_v37 }
 0x425   : > { %2157 = vmatpush3.bf16.msra.mxu1 %v2773_v7  ;;  %v1385_v7 = vpack.c.bf16 %v1363_v23, %v1363_v23  ;;  %v1321_v9 = vpop.xlane.xlu1 %1320 }
 0x426   : > { %v2351_v20 = vpop.eup %2350  ;;  %2158 = vmatprep.subr.bf16.mxu1 %v1612_v51  ;;  %v1386_v63 = vpack.c.bf16 %v1365_v56, %v1364_v62 }
 0x427   : > { %v1303_v29 = vpop.xlane.xlu0 %1302  ;;  %v1361_v50 = vmul.f32 %v2351_v20, %v2888_v59  ;;  %v2353_v8 = vpop.eup %2352 }
 0x428   : > { %2362 = vrcp.f32 %v1303_v29  ;;  %v1367_v37 = vmul.f32 %v2353_v8, %v2852_v52 }
 0x429   : > { %2159 = vmatpush3.bf16.msra.mxu1 %v1612_v51  ;;  %v1384_v60 = vpack.c.bf16 %v1362_v38, %v1361_v50  ;;  %2364 = vrcp.f32 %v1306_v30  ;;  %v1318_v18 = vpop.xlane.xlu1 %1317 }
 0x42a   : > { %2168 = vmatprep.subr.bf16.mxu1 %v2927_v42  ;;  %v2355_v59 = vpop.eup %2354 }
 0x42b   : > { %2148 = vmatprep.mubr.msk.bf16.mxu1 %vm654_vm3, %v1384_v60  ;;  %v1312_v46 = vpop.xlane.xlu0 %1311  ;;  %v2357_v34 = vpop.eup %2356  ;;  %v1369_v58 = vmul.f32 %v2355_v59, %v2893_v25 }
 0x42c   : > { %2149 = vmatmul.mubr.msk.bf16.gmra.mrb[20].mxu1 %vm654_vm3, %v1385_v7  ;;  %v2359_v35 = vpop.eup %2358  ;;  %v1366_v15 = vmul.f32 %v2357_v34, %v2832_v48  ;;  %2366 = vrcp.f32 %v1312_v46 }
 0x42d   : > { %2160 = vmatprep.mubr.msk.bf16.mxu1 %vm654_vm3, %v1386_v63  ;;  %v1368_v2 = vmul.f32 %v2359_v35, %v2869_v47  ;;  %v2361_v27 = vpop.eup %2360  ;;  %v1692_v25 = vpop.permute.xlu1 %1691 }
 0x42e   : > { %v1387_v13 = vpack.c.bf16 %v1367_v37, %v1366_v15  ;;  %v1370_v48 = vmul.f32 %v2361_v27, %v2877_v32  ;;  %v1709_v6 = vand.u32 %v1692_v25, %v2434_v4 }
 0x42f   : > { %v1315_v16 = vpop.xlane.xlu0 %1314  ;;  %v1388_v55 = vpack.c.bf16 %v1369_v58, %v1368_v2 }
 0x430   : > { %2368 = vrcp.f32 %v1315_v16  ;;  %v1389_v33 = vpack.c.bf16 %v1370_v48, %v1370_v48 }
 0x431   : > { %2370 = vrcp.f32 %v1309_v53 }
 0x432   : > { %v2363_v28 = vpop.eup %2362  ;;  %2372 = vrcp.f32 %v1318_v18 }
 0x433   : > { %v2365_v52 = vpop.eup %2364  ;;  %v1371_v47 = vmul.f32 %v2363_v28, %v2907_v36  ;;  %2374 = vrcp.f32 %v1321_v9  ;;  %v1690_v22 = vpop.permute.xlu0 %1689 }
 0x434   : > { %2161 = vmatmul.mubr.msk.bf16.vlgmr.msra.gmra.mrb[16].mxu1 %vm654_vm3, %v1387_v13  ;;  %v1372_v31 = vmul.f32 %v2365_v52, %v2899_v49 }
 0x435   : > { %2169 = vmatpush3.bf16.msra.mxu1 %v2927_v42  ;;  %2164 = vmatprep.mubr.msk.bf16.mxu1 %vm654_vm3, %v1388_v55 }
 0x436   : > { %2170 = vmatprep.subr.bf16.mxu1 %v2933_v11  ;;  %v2367_v24 = vpop.eup %2366  ;;  %v1390_v42 = vpack.c.bf16 %v1372_v31, %v1371_v47 }
 0x437   : > { %v1374_v36 = vmul.f32 %v2367_v24, %v2915_v26 }
 0x439   : > { %2171 = vmatpush3.bf16.msra.mxu1 %v2933_v11 }
 0x43a   : > { %2172 = vmatprep.subr.bf16.mxu1 %v1690_v22  ;;  %v2369_v0 = vpop.eup %2368 }
 0x43b   : > { %v2371_v12 = vpop.eup %2370  ;;  %v1375_v49 = vmul.f32 %v2369_v0, %v2921_v17 }
 0x43c   : > { %2165 = vmatmul.mubr.msk.bf16.gmra.mrb[20].mxu1 %vm654_vm3, %v1389_v33  ;;  %v2373_v32 = vpop.eup %2372  ;;  %v1373_v11 = vmul.f32 %v2371_v12, %v2895_v57  ;;  %v1914_v57 = vld [vmem:[%s3018_s3] ss:$0 sm:$0xff] }
 0x43d   : > { %2173 = vmatpush3.bf16.msra.mxu1 %v1690_v22  ;;  %2176 = vmatprep.mubr.msk.bf16.mxu1 %vm654_vm3, %v1390_v42  ;;  %v1376_v40 = vmul.f32 %v2373_v32, %v2911_v5  ;;  %v2375_v4 = vpop.eup %2374 }
 0x43e   : > { %2174 = vmatprep.subr.bf16.mxu1 %v1709_v6  ;;  %v1391_v61 = vpack.c.bf16 %v1374_v36, %v1373_v11  ;;  %v1377_v1 = vmul.f32 %v2375_v4, %v2903_v3 }
 0x43f   : > { %v1392_v41 = vpack.c.bf16 %v1376_v40, %v1375_v49 }
 0x440   : > { %v1393_v43 = vpack.c.bf16 %v1377_v1, %v1377_v1 }
 0x441   : > { %2175 = vmatpush3.bf16.msra.mxu1 %v1709_v6 }
 0x444   : > { %2177 = vmatmul.mubr.msk.bf16.vlgmr.msra.gmra.mrb[16].mxu1 %vm654_vm3, %v1391_v61 }
 0x445   : > { %2180 = vmatprep.mubr.msk.bf16.mxu1 %vm654_vm3, %v1392_v41 }
 0x44c   : > { %2181 = vmatmul.mubr.msk.bf16.gmra.mrb[20].mxu1 %vm654_vm3, %v1393_v43 }
 0x517   : > { %v2178_v5 = vpop.f32.mrb[16].mxu1 }
 0x518   : > { %v2184_v26 = vadd.f32 %v2178_v5, %v1914_v57  ;;  %v1745_v17 = vpop.f32.mrb[17].mxu1 }
 0x519   : > { %v2185_v45 = vadd.f32 %v1914_v57, %v1745_v17  ;;  %v2179_v14 = vpop.f32.mrb[18].mxu1 }
 0x51a   : > { %1785 = vst.msk [vmem:[%s197_s29 + $0x10] sm:$0xff] %vm1782_vm5, %v2184_v26  ;;  %v2186_v3 = vadd.f32 %v2179_v14, %v1914_v57  ;;  %v1748_v19 = vpop.f32.mrb[19].mxu1 }
 0x51b   : > { %1783 = vst.msk [vmem:[%s197_s29] sm:$0xff] %vm1782_vm5, %v2185_v45  ;;  %v2187_v10 = vadd.f32 %v1914_v57, %v1748_v19 }
 0x51c   : > { %1786 = vst.msk [vmem:[%s197_s29 + $0x18] sm:$0xff] %vm1782_vm5, %v2186_v3 }
 0x51d   : > { %1784 = vst.msk [vmem:[%s197_s29 + $0x8] sm:$0xff] %vm1782_vm5, %v2187_v10 }
 0x51f   : > { %v2182_v44 = vpop.f32.mrb[20].mxu1 }
 0x520   : > { %v2188_v39 = vadd.f32 %v2182_v44, %v1914_v57  ;;  %v1761_v53 = vpop.f32.mrb[21].mxu1 }
 0x521   : > { %v2189_v54 = vadd.f32 %v1914_v57, %v1761_v53  ;;  %v2183_v51 = vpop.f32.mrb[22].mxu1 }
 0x522   : > { %1790 = vst.msk [vmem:[%s197_s29 + $0x30] sm:$0x1] %vm1789_vm6, %v2188_v39  ;;  %v1764_v21 = vpop.f32.mrb[23].mxu1 }
 0x523   : > { %1787 = vst.msk [vmem:[%s197_s29 + $0x20] sm:$0xff] %vm1782_vm5, %v2189_v54  ;;  %v2190_v30 = vadd.f32 %v1914_v57, %v1764_v21 }
 0x525   : > { %1788 = vst.msk [vmem:[%s197_s29 + $0x28] sm:$0xff] %vm1782_vm5, %v2190_v30 }
 0x526 PF: > { %s14_s15 = sadd.s32 1, %s2382_s15  }
 0x527   : > { %p11_p4 = scmp.ge.s32.totalorder %s14_s15, 4  }
 0x529   :  { %13 = sbr.rel (!%p11_p4) target bundleno = 1 (0x1), region = 71 }

</bundles_post_ra>
